<compile_context>
chip_gen: v7x
topology: tpu7x:2x2x1
jax: 0.10.0
libtpu: 0.0.40
codegen_flags: <defaults>
</compile_context>

<pallas_src>
import jax
import jax.numpy as jnp
from jax.experimental import pallas as pl
from jax.experimental.pallas import tpu as pltpu

IN_FEATURES = 500     # layer1 input features
HIDDEN = 1000         # layer1 output features (only used to build parameters)
K_PAD = 512           # IN_FEATURES padded up for (8, 128) tiling
TILE_B_MAX = 256      # batch tile (amortizes grid-step overhead; >=2 tiles on
                      # v7x once the deployment batch exceeds 256)


def quad1_kernel(x_ref, g_ref, rb_ref, o_ref):
    # x_ref : (TILE_B, K_PAD)  batch-major tile of x, zero padded features
    # g_ref : (K_PAD, K_PAD)   G = (W1^T W1) * readout_w, zero padded, VMEM resident
    # rb_ref: (1, 1) SMEM      readout bias
    # o_ref : (TILE_B, 1)      per-example outputs
    x = x_ref[...]
    # MXU: M=TILE_B, K=512, N=512 -> full-width on every TPU generation.
    t = jnp.dot(x, g_ref[...], preferred_element_type=jnp.float32)   # (TILE_B, K_PAD)
    # quadratic form per row b: sum_i x[b,i] * (x G)[b,i]   (lane-axis reduce, XLU)
    o_ref[...] = jnp.sum(x * t, axis=-1, keepdims=True) + rb_ref[0, 0]


def prepare_params(w_t, readout_w):
    """Fold the static weights into the padded Gram matrix G (done once)."""
    g = jnp.dot(w_t, w_t.T, precision=jax.lax.Precision.HIGHEST)      # (500, 500)
    g = g * readout_w[0, 0]
    return jnp.pad(g, ((0, K_PAD - IN_FEATURES), (0, K_PAD - IN_FEATURES)))


def quad1_forward(x, g_pad, readout_b, *, max_tile_b=TILE_B_MAX):
    B = x.shape[0]
    b_ceil = pl.cdiv(B, 128) * 128
    tile_b = min(max_tile_b, b_ceil)            # don't over-pad tiny batches
    num_tiles = pl.cdiv(b_ceil, tile_b)
    b_pad = num_tiles * tile_b

    # Batch-major, zero padded; no transpose pass over x.
    xp = jnp.pad(x.astype(jnp.float32),
                 ((0, b_pad - B), (0, K_PAD - IN_FEATURES)))

    flops = 2 * b_pad * K_PAD * K_PAD + 3 * b_pad * K_PAD
    bytes_accessed = (b_pad * K_PAD + K_PAD * K_PAD + b_pad) * 4

    out = pl.pallas_call(
        quad1_kernel,
        out_shape=jax.ShapeDtypeStruct((b_pad, 1), jnp.float32),
        grid=(num_tiles,),
        in_specs=[
            pl.BlockSpec((tile_b, K_PAD), lambda i: (i, 0)),   # x batch tile
            pl.BlockSpec((K_PAD, K_PAD), lambda i: (0, 0)),    # G, VMEM resident
            pl.BlockSpec(memory_space=pltpu.SMEM),             # readout bias scalar
        ],
        out_specs=pl.BlockSpec((tile_b, 1), lambda i: (i, 0)),
        compiler_params=pltpu.CompilerParams(
            dimension_semantics=("parallel",)),
        cost_estimate=pl.CostEstimate(
            flops=flops, transcendentals=0, bytes_accessed=bytes_accessed),
    )(xp, g_pad, readout_b)

    y = out[:B, 0]
    if B == 1:
        # torch's x.squeeze() gives a 0-d scalar for batch size 1
        y = y[0]
    return y


def reference_forward(x, w_t, readout_w, readout_b):
    # Direct (un-refactored) forward, matching the torch module step by step.
    h = jnp.dot(x.astype(jnp.float32), w_t,
                precision=jax.lax.Precision.HIGHEST)           # (B, 1000)
    s = jnp.sum(h * h, axis=1, keepdims=True)                  # (B, 1)
    y = s * readout_w[0, 0] + readout_b[0, 0]                  # (B, 1)
    return jnp.squeeze(y)


if __name__ == "__main__":
    key = jax.random.PRNGKey(0)
    k_x, k_w, k_rw, k_rb = jax.random.split(key, 4)

    B = 8
    # nn.Linear(500, 1000, bias=False).weight is (1000, 500); store transposed.
    w_t = jax.random.normal(k_w, (IN_FEATURES, HIDDEN), dtype=jnp.float32) * (
        1.0 / jnp.sqrt(IN_FEATURES))
    readout_w = jax.random.normal(k_rw, (1, 1), dtype=jnp.float32)
    readout_b = jax.random.normal(k_rb, (1, 1), dtype=jnp.float32)

    x = jax.random.normal(k_x, (B, IN_FEATURES), dtype=jnp.float32)

    # One-time parameter preparation (inference-time static weights).
    g_pad = prepare_params(w_t, readout_w)

    y = quad1_forward(x, g_pad, readout_b)
    y = jax.block_until_ready(y)

    y_ref = reference_forward(x, w_t, readout_w, readout_b)
    assert y.shape == (B,), y.shape
    assert jnp.allclose(y, y_ref, rtol=1e-4, atol=5e-3), (y, y_ref)

    print("KERNEL_OK")
</pallas_src>

<mosaic_0001>
module attributes {stable_mosaic.version = 11 : i64} {
  func.func @quad1_kernel(%arg0: i32, %arg1: memref<128x512xf32, #tpu.memory_space<vmem>>, %arg2: memref<512x512xf32, #tpu.memory_space<vmem>>, %arg3: memref<1x1xf32, #tpu.memory_space<smem>>, %arg4: memref<128x1xf32, #tpu.memory_space<vmem>>) attributes {dimension_semantics = [#tpu.dimension_semantics<parallel>], iteration_bounds = array<i64: 1>, scalar_prefetch = 0 : i64, scratch_operands = 0 : i64, tpu.core_type = #tpu.core_type<tc>, window_params = [{transform_indices = @transform_0, window_bounds = array<i64: 128, 512>}, {pipeline_mode = #tpu.pipeline_mode<synchronous>, transform_indices = @transform_1, window_bounds = array<i64: 512, 512>}, {transform_indices = @transform_2, window_bounds = array<i64: 1, 1>}, {transform_indices = @transform_3, window_bounds = array<i64: 128, 1>}]} {
    %c0 = arith.constant 0 : index
    %c0_0 = arith.constant 0 : index
    %0 = vector.load %arg1[%c0, %c0_0] : memref<128x512xf32, #tpu.memory_space<vmem>>, vector<128x512xf32>
    %c0_1 = arith.constant 0 : index
    %c0_2 = arith.constant 0 : index
    %1 = vector.load %arg2[%c0_1, %c0_2] : memref<512x512xf32, #tpu.memory_space<vmem>>, vector<512x512xf32>
    %cst = arith.constant dense<0.000000e+00> : vector<128x512xf32>
    %2 = tpu.matmul %0, %1, %cst {dimension_numbers = #tpu.dot_dimension_numbers<[1], [0], [0], [1], [0, 0, 1, 1], [], []>} : vector<128x512xf32>, vector<512x512xf32>, vector<128x512xf32> -> vector<128x512xf32>
    %3 = arith.mulf %0, %2 : vector<128x512xf32>
    %cst_3 = arith.constant dense<0.000000e+00> : vector<128xf32>
    %4 = vector.multi_reduction <add>, %3, %cst_3 [1] : vector<128x512xf32> to vector<128xf32>
    %5 = vector.shape_cast %4 : vector<128xf32> to vector<128x1xf32>
    %c0_4 = arith.constant 0 : index
    %c0_5 = arith.constant 0 : index
    %6 = memref.load %arg3[%c0_4, %c0_5] : memref<1x1xf32, #tpu.memory_space<smem>>
    %7 = vector.broadcast %6 : f32 to vector<128x1xf32>
    %8 = arith.addf %5, %7 : vector<128x1xf32>
    %c0_6 = arith.constant 0 : index
    %c0_7 = arith.constant 0 : index
    %9 = vector.load %arg4[%c0_6, %c0_7] : memref<128x1xf32, #tpu.memory_space<vmem>>, vector<128x1xf32>
    tpu.vector_store %arg4[%c0_6, %c0_7], %8 {strides = array<i32>} : memref<128x1xf32, #tpu.memory_space<vmem>>, vector<128x1xf32>,
    return
  }
  func.func @transform_0(%arg0: i32) -> (i32, i32) {
    %c0_i32 = arith.constant 0 : i32
    %c0_i32_0 = arith.constant 0 : i32
    return %arg0, %c0_i32 : i32, i32
  }
  func.func @transform_1(%arg0: i32) -> (i32, i32) {
    %c0_i32 = arith.constant 0 : i32
    %c0_i32_0 = arith.constant 0 : i32
    %c0_i32_1 = arith.constant 0 : i32
    return %c0_i32, %c0_i32_0 : i32, i32
  }
  func.func @transform_2(%arg0: i32) -> (i32, i32) {
    %c0_i32 = arith.constant 0 : i32
    %c0_i32_0 = arith.constant 0 : i32
    %c0_i32_1 = arith.constant 0 : i32
    return %c0_i32, %c0_i32_0 : i32, i32
  }
  func.func @transform_3(%arg0: i32) -> (i32, i32) {
    %c0_i32 = arith.constant 0 : i32
    %c0_i32_0 = arith.constant 0 : i32
    return %arg0, %c0_i32 : i32, i32
  }
}

</mosaic_0001>

<bundles_post_ra>
// kernel: tpu_custom_call.1
= control target key start
LH: loop header
LB: loop body
LE: loop exit
PB: predicated region body
PF: predicated region fallthrough
CT: control target
= control target key end

     0   :  { %9 = vsyncpa [#allocation4], 0  ;;  %s1995_s0 = inlined_call_operand.hbm [shape: f32[128,512], index: 0, kind: input, shape index: {}]   ;;  %s1996_s1 = inlined_call_operand.hbm [shape: f32[512,512], index: 1, kind: input, shape index: {}]   ;;  %s1997_s2 = inlined_call_operand.<no memory space> [shape: f32[1,1], index: 2, kind: input, shape index: {}]   ;;  %s1998_s3 = inlined_call_operand.vmem [shape: f32[128,1], index: 3, kind: output, shape index: {}]  }
   0x1   :  { %10 = vsyncpa [#allocation6], 0  ;;  %s1565_s12 = smov [#allocation3]   ;;  %s1517_s16 = scalar_lea.hbm %s1995_s0, 8192 }
   0x2   :  { %s16_s13 = sshll.u32 %s1565_s12, 4  ;;  %p1518_p0 = scmp.ne.s32.totalorder %s1995_s0, %s1517_s16  ;;  %s17_s13 = int_to_ptr.vmem [resolvable:$true] %s16_s13 }
   0x3   :  { %p1521_p1 = scmp.lt.u32.totalorder %s1517_s16, %s1995_s0 }
   0x5   :  { %p1523_p2 = pnand %p1521_p1, %p1518_p0 }
   0x7   :  { %1526 = shalt.err (!%p1523_p2)
}
   0x8   :  { %s1527_s21 = scalar_lea.vmem %s17_s13, 8192  ;;  %p1532_p4 = scmp.lt.s32.totalorder %s17_s13, %s17_s13 }
   0x9   :  { %p1528_p3 = scmp.ne.s32.totalorder %s17_s13, %s1527_s21  ;;  %p1533_p5 = scmp.lt.s32.totalorder %s1527_s21, %s1527_s21 }
   0xb   :  { %p1534_p6 = por %p1533_p5, %p1532_p4 }
   0xd   :  { %p1535_p7 = pnand %p1534_p6, %p1528_p3 }
   0xf   :  { %1538 = shalt.err (!%p1535_p7)
}
  0x10   :  { %s1566_s22 = smov 512   ;;  %s1567_s23 = smov 32  }
  0x11   :  { %22 = dma.hbm_to_vmem [thread:$0]  %s1995_s0, 8192, %s17_s13, [#allocation4], %s1566_s22, %s1566_s22, %s1567_s23  }
  0x12   :  { %s1568_s26 = smov [#allocation5]   ;;  %s1539_s30 = scalar_lea.hbm %s1996_s1, 32768 }
  0x13   :  { %s28_s27 = sshll.u32 %s1568_s26, 4  ;;  %p1540_p8 = scmp.ne.s32.totalorder %s1996_s1, %s1539_s30  ;;  %s29_s27 = int_to_ptr.vmem [resolvable:$true] %s28_s27 }
  0x14   :  { %p1543_p9 = scmp.lt.u32.totalorder %s1539_s30, %s1996_s1 }
  0x16   :  { %p1545_p10 = pnand %p1543_p9, %p1540_p8 }
  0x18   :  { %1548 = shalt.err (!%p1545_p10)
}
  0x19   :  { %s1549_s8 = scalar_lea.vmem %s29_s27, 32768  ;;  %p1554_p12 = scmp.lt.s32.totalorder %s29_s27, %s29_s27 }
  0x1a   :  { %p1550_p11 = scmp.ne.s32.totalorder %s29_s27, %s1549_s8  ;;  %p1555_p13 = scmp.lt.s32.totalorder %s1549_s8, %s1549_s8 }
  0x1c   :  { %p1556_p0 = por %p1555_p13, %p1554_p12 }
  0x1e   :  { %p1557_p1 = pnand %p1556_p0, %p1550_p11 }
  0x20   :  { %1560 = shalt.err (!%p1557_p1)
}
  0x21   :  { %34 = dma.hbm_to_vmem [thread:$0]  %s1996_s1, 32768, %s29_s27, [#allocation6], %s1566_s22, %s1566_s22, %s1567_s23  }
  0x22   :  { %1561 = dma.done.wait [#allocation4], 8192  }
  0x23   :  { %1562 = vsyncadd [#allocation4], 4294959104 }
  0x24   :  { %1563 = dma.done.wait [#allocation6], 32768  }
  0x25   :  { %1564 = vsyncadd [#allocation6], 4294934528  ;;  %v108_v0 = vld [vmem:[#allocation5 + $0x8] sm:$0xff]  ;;  %v110_v2 = vld [vmem:[#allocation5 + $0x18] sm:$0xff]  ;;  %vm1169_vm0 = vcmask 7168  }
  0x26   :  { %v112_v1 = vld [vmem:[#allocation5 + $0x28] sm:$0xff]  ;;  %v114_v4 = vld [vmem:[#allocation5 + $0x38] sm:$0xff]  ;;  %v107_v5 = vld [vmem:[#allocation5] sm:$0xff] }
  0x27   :  { %v1192_v3 = vpack.c.bf16 %v112_v1, %v108_v0  ;;  %v111_v6 = vld [vmem:[#allocation5 + $0x20] sm:$0xff]  ;;  %v1320_v7 = vpack.c.bf16 %v114_v4, %v110_v2  ;;  %v109_v9 = vld [vmem:[#allocation5 + $0x10] sm:$0xff]  ;;  %v116_v11 = vld [vmem:[#allocation5 + $0x48] sm:$0xff] }
  0x28   :  { %v1194_v8 = vpack.c.bf16 %v111_v6, %v107_v5  ;;  %v113_v10 = vld [vmem:[#allocation5 + $0x30] sm:$0xff]  ;;  %v120_v13 = vld [vmem:[#allocation5 + $0x68] sm:$0xff]  ;;  %v118_v14 = vld [vmem:[#allocation5 + $0x58] sm:$0xff] }
  0x29   :  { %1193 = vmatprep.subr.bf16.mxu0 %v1192_v3  ;;  %v1322_v12 = vpack.c.bf16 %v113_v10, %v109_v9  ;;  %v122_v15 = vld [vmem:[#allocation5 + $0x78] sm:$0xff]  ;;  %1321 = vmatprep.subr.bf16.mxu1 %v1320_v7  ;;  %v1196_v16 = vpack.c.bf16 %v120_v13, %v116_v11  ;;  %v115_v18 = vld [vmem:[#allocation5 + $0x40] sm:$0xff]  ;;  %v117_v20 = vld [vmem:[#allocation5 + $0x50] sm:$0xff] }
  0x2a   :  { %1195 = vmatpush1.bf16.msra.mxu0 %v1194_v8  ;;  %v1324_v17 = vpack.c.bf16 %v122_v15, %v118_v14  ;;  %v119_v19 = vld [vmem:[#allocation5 + $0x60] sm:$0xff]  ;;  %v121_v22 = vld [vmem:[#allocation5 + $0x70] sm:$0xff]  ;;  %v124_v23 = vld [vmem:[#allocation5 + $0x88] sm:$0xff] }
  0x2b   :  { %1323 = vmatpush1.bf16.msra.mxu1 %v1322_v12  ;;  %v1198_v21 = vpack.c.bf16 %v119_v19, %v115_v18  ;;  %v128_v24 = vld [vmem:[#allocation5 + $0xa8] sm:$0xff]  ;;  %1197 = vmatprep.subr.bf16.mxu0 %v1196_v16  ;;  %v1326_v25 = vpack.c.bf16 %v121_v22, %v117_v20  ;;  %v126_v27 = vld [vmem:[#allocation5 + $0x98] sm:$0xff]  ;;  %v123_v29 = vld [vmem:[#allocation5 + $0x80] sm:$0xff] }
  0x2c   :  { %1325 = vmatprep.subr.bf16.mxu1 %v1324_v17  ;;  %v1200_v26 = vpack.c.bf16 %v128_v24, %v124_v23  ;;  %v130_v28 = vld [vmem:[#allocation5 + $0xb8] sm:$0xff]  ;;  %v127_v31 = vld [vmem:[#allocation5 + $0xa0] sm:$0xff]  ;;  %v125_v32 = vld [vmem:[#allocation5 + $0x90] sm:$0xff] }
  0x2d   :  { %v1328_v30 = vpack.c.bf16 %v130_v28, %v126_v27  ;;  %v129_v33 = vld [vmem:[#allocation5 + $0xb0] sm:$0xff]  ;;  %v1202_v34 = vpack.c.bf16 %v127_v31, %v123_v29  ;;  %v132_v35 = vld [vmem:[#allocation5 + $0xc8] sm:$0xff]  ;;  %v134_v37 = vld [vmem:[#allocation5 + $0xd8] sm:$0xff] }
  0x2e   :  { %1199 = vmatpush1.bf16.msra.mxu0 %v1198_v21  ;;  %v136_v36 = vld [vmem:[#allocation5 + $0xe8] sm:$0xff]  ;;  %v1330_v38 = vpack.c.bf16 %v129_v33, %v125_v32  ;;  %v138_v40 = vld [vmem:[#allocation5 + $0xf8] sm:$0xff]  ;;  %v131_v41 = vld [vmem:[#allocation5 + $0xc0] sm:$0xff] }
  0x2f   :  { %1327 = vmatpush1.bf16.msra.mxu1 %v1326_v25  ;;  %1201 = vmatprep.subr.bf16.mxu0 %v1200_v26  ;;  %v1204_v39 = vpack.c.bf16 %v136_v36, %v132_v35  ;;  %v135_v42 = vld [vmem:[#allocation5 + $0xe0] sm:$0xff]  ;;  %v1332_v43 = vpack.c.bf16 %v138_v40, %v134_v37  ;;  %v133_v44 = vld [vmem:[#allocation5 + $0xd0] sm:$0xff]  ;;  %v140_v46 = vld [vmem:[#allocation5 + $0x108] sm:$0xff] }
  0x30   :  { %1329 = vmatprep.subr.bf16.mxu1 %v1328_v30  ;;  %v137_v45 = vld [vmem:[#allocation5 + $0xf0] sm:$0xff]  ;;  %v144_v47 = vld [vmem:[#allocation5 + $0x128] sm:$0xff]  ;;  %v142_v48 = vld [vmem:[#allocation5 + $0x118] sm:$0xff]  ;;  %v1206_v50 = vpack.c.bf16 %v135_v42, %v131_v41 }
  0x31   :  { %v146_v49 = vld [vmem:[#allocation5 + $0x138] sm:$0xff]  ;;  %v1334_v51 = vpack.c.bf16 %v137_v45, %v133_v44  ;;  %v1208_v52 = vpack.c.bf16 %v144_v47, %v140_v46  ;;  %v139_v53 = vld [vmem:[#allocation5 + $0x100] sm:$0xff]  ;;  %v141_v55 = vld [vmem:[#allocation5 + $0x110] sm:$0xff] }
  0x32   :  { %1203 = vmatpush1.bf16.msra.mxu0 %v1202_v34  ;;  %v143_v54 = vld [vmem:[#allocation5 + $0x120] sm:$0xff]  ;;  %v1336_v56 = vpack.c.bf16 %v146_v49, %v142_v48  ;;  %v145_v57 = vld [vmem:[#allocation5 + $0x130] sm:$0xff]  ;;  %v148_v58 = vld [vmem:[#allocation5 + $0x148] sm:$0xff] }
  0x33   :  { %1331 = vmatpush1.bf16.msra.mxu1 %v1330_v38  ;;  %1205 = vmatprep.subr.bf16.mxu0 %v1204_v39  ;;  %v152_v59 = vld [vmem:[#allocation5 + $0x168] sm:$0xff]  ;;  %v150_v60 = vld [vmem:[#allocation5 + $0x158] sm:$0xff]  ;;  %v1210_v62 = vpack.c.bf16 %v143_v54, %v139_v53  ;;  %v1338_v63 = vpack.c.bf16 %v145_v57, %v141_v55  ;;  %v147_v1 = vld [vmem:[#allocation5 + $0x140] sm:$0xff] }
  0x34   :  { %1333 = vmatprep.subr.bf16.mxu1 %v1332_v43  ;;  %v154_v61 = vld [vmem:[#allocation5 + $0x178] sm:$0xff]  ;;  %v1212_v0 = vpack.c.bf16 %v152_v59, %v148_v58  ;;  %v151_v2 = vld [vmem:[#allocation5 + $0x160] sm:$0xff]  ;;  %v149_v3 = vld [vmem:[#allocation5 + $0x150] sm:$0xff] }
  0x35   :  { %v1340_v4 = vpack.c.bf16 %v154_v61, %v150_v60  ;;  %v153_v5 = vld [vmem:[#allocation5 + $0x170] sm:$0xff]  ;;  %v156_v6 = vld [vmem:[#allocation5 + $0x188] sm:$0xff]  ;;  %v158_v8 = vld [vmem:[#allocation5 + $0x198] sm:$0xff]  ;;  %v1214_v10 = vpack.c.bf16 %v151_v2, %v147_v1 }
  0x36   :  { %1207 = vmatpush1.bf16.msra.mxu0 %v1206_v50  ;;  %v160_v7 = vld [vmem:[#allocation5 + $0x1a8] sm:$0xff]  ;;  %v162_v9 = vld [vmem:[#allocation5 + $0x1b8] sm:$0xff]  ;;  %v1342_v11 = vpack.c.bf16 %v153_v5, %v149_v3  ;;  %v155_v13 = vld [vmem:[#allocation5 + $0x180] sm:$0xff] }
  0x37   :  { %1335 = vmatpush1.bf16.msra.mxu1 %v1334_v51  ;;  %1209 = vmatprep.subr.bf16.mxu0 %v1208_v52  ;;  %v1216_v12 = vpack.c.bf16 %v160_v7, %v156_v6  ;;  %v159_v14 = vld [vmem:[#allocation5 + $0x1a0] sm:$0xff]  ;;  %v157_v15 = vld [vmem:[#allocation5 + $0x190] sm:$0xff]  ;;  %v1344_v16 = vpack.c.bf16 %v162_v9, %v158_v8  ;;  %v164_v18 = vld [vmem:[#allocation5 + $0x1c8] sm:$0xff] }
  0x38   :  { %1337 = vmatprep.subr.bf16.mxu1 %v1336_v56  ;;  %v161_v17 = vld [vmem:[#allocation5 + $0x1b0] sm:$0xff]  ;;  %v168_v19 = vld [vmem:[#allocation5 + $0x1e8] sm:$0xff]  ;;  %v166_v20 = vld [vmem:[#allocation5 + $0x1d8] sm:$0xff]  ;;  %v1218_v22 = vpack.c.bf16 %v159_v14, %v155_v13 }
  0x39   :  { %v170_v21 = vld [vmem:[#allocation5 + $0x1f8] sm:$0xff]  ;;  %v1346_v23 = vpack.c.bf16 %v161_v17, %v157_v15  ;;  %v1220_v24 = vpack.c.bf16 %v168_v19, %v164_v18  ;;  %v163_v25 = vld [vmem:[#allocation5 + $0x1c0] sm:$0xff]  ;;  %v165_v27 = vld [vmem:[#allocation5 + $0x1d0] sm:$0xff] }
  0x3a   :  { %1211 = vmatpush1.bf16.msra.mxu0 %v1210_v62  ;;  %v167_v26 = vld [vmem:[#allocation5 + $0x1e0] sm:$0xff]  ;;  %v1348_v28 = vpack.c.bf16 %v170_v21, %v166_v20  ;;  %v169_v29 = vld [vmem:[#allocation5 + $0x1f0] sm:$0xff]  ;;  %v172_v30 = vld [vmem:[#allocation5 + $0x208] sm:$0xff] }
  0x3b   :  { %1339 = vmatpush1.bf16.msra.mxu1 %v1338_v63  ;;  %1213 = vmatprep.subr.bf16.mxu0 %v1212_v0  ;;  %v176_v31 = vld [vmem:[#allocation5 + $0x228] sm:$0xff]  ;;  %v174_v32 = vld [vmem:[#allocation5 + $0x218] sm:$0xff]  ;;  %v1222_v34 = vpack.c.bf16 %v167_v26, %v163_v25  ;;  %v1350_v35 = vpack.c.bf16 %v169_v29, %v165_v27  ;;  %v171_v37 = vld [vmem:[#allocation5 + $0x200] sm:$0xff] }
  0x3c   :  { %1341 = vmatprep.subr.bf16.mxu1 %v1340_v4  ;;  %v178_v33 = vld [vmem:[#allocation5 + $0x238] sm:$0xff]  ;;  %v1224_v36 = vpack.c.bf16 %v176_v31, %v172_v30  ;;  %v175_v38 = vld [vmem:[#allocation5 + $0x220] sm:$0xff]  ;;  %v173_v39 = vld [vmem:[#allocation5 + $0x210] sm:$0xff] }
  0x3d   :  { %v1352_v40 = vpack.c.bf16 %v178_v33, %v174_v32  ;;  %v177_v41 = vld [vmem:[#allocation5 + $0x230] sm:$0xff]  ;;  %v180_v42 = vld [vmem:[#allocation5 + $0x248] sm:$0xff]  ;;  %v182_v44 = vld [vmem:[#allocation5 + $0x258] sm:$0xff]  ;;  %v1226_v46 = vpack.c.bf16 %v175_v38, %v171_v37 }
  0x3e   :  { %1215 = vmatpush1.bf16.msra.mxu0 %v1214_v10  ;;  %v184_v43 = vld [vmem:[#allocation5 + $0x268] sm:$0xff]  ;;  %v186_v45 = vld [vmem:[#allocation5 + $0x278] sm:$0xff]  ;;  %v1354_v47 = vpack.c.bf16 %v177_v41, %v173_v39  ;;  %v179_v49 = vld [vmem:[#allocation5 + $0x240] sm:$0xff] }
  0x3f   :  { %1343 = vmatpush1.bf16.msra.mxu1 %v1342_v11  ;;  %1217 = vmatprep.subr.bf16.mxu0 %v1216_v12  ;;  %v1228_v48 = vpack.c.bf16 %v184_v43, %v180_v42  ;;  %v183_v50 = vld [vmem:[#allocation5 + $0x260] sm:$0xff]  ;;  %v181_v51 = vld [vmem:[#allocation5 + $0x250] sm:$0xff]  ;;  %v1356_v52 = vpack.c.bf16 %v186_v45, %v182_v44  ;;  %v188_v54 = vld [vmem:[#allocation5 + $0x288] sm:$0xff] }
  0x40   :  { %1345 = vmatprep.subr.bf16.mxu1 %v1344_v16  ;;  %v185_v53 = vld [vmem:[#allocation5 + $0x270] sm:$0xff]  ;;  %v192_v55 = vld [vmem:[#allocation5 + $0x2a8] sm:$0xff]  ;;  %v190_v56 = vld [vmem:[#allocation5 + $0x298] sm:$0xff]  ;;  %v1230_v58 = vpack.c.bf16 %v183_v50, %v179_v49 }
  0x41   :  { %v194_v57 = vld [vmem:[#allocation5 + $0x2b8] sm:$0xff]  ;;  %v1358_v59 = vpack.c.bf16 %v185_v53, %v181_v51  ;;  %v1232_v60 = vpack.c.bf16 %v192_v55, %v188_v54  ;;  %v187_v61 = vld [vmem:[#allocation5 + $0x280] sm:$0xff]  ;;  %v189_v63 = vld [vmem:[#allocation5 + $0x290] sm:$0xff] }
  0x42   :  { %1219 = vmatpush1.bf16.msra.mxu0 %v1218_v22  ;;  %v191_v62 = vld [vmem:[#allocation5 + $0x2a0] sm:$0xff]  ;;  %v1360_v0 = vpack.c.bf16 %v194_v57, %v190_v56  ;;  %v193_v1 = vld [vmem:[#allocation5 + $0x2b0] sm:$0xff]  ;;  %v196_v2 = vld [vmem:[#allocation5 + $0x2c8] sm:$0xff] }
  0x43   :  { %1347 = vmatpush1.bf16.msra.mxu1 %v1346_v23  ;;  %1221 = vmatprep.subr.bf16.mxu0 %v1220_v24  ;;  %v200_v3 = vld [vmem:[#allocation5 + $0x2e8] sm:$0xff]  ;;  %v198_v4 = vld [vmem:[#allocation5 + $0x2d8] sm:$0xff]  ;;  %v1234_v6 = vpack.c.bf16 %v191_v62, %v187_v61  ;;  %v195_v7 = vld [vmem:[#allocation5 + $0x2c0] sm:$0xff]  ;;  %v1362_v8 = vpack.c.bf16 %v193_v1, %v189_v63 }
  0x44   :  { %1349 = vmatprep.subr.bf16.mxu1 %v1348_v28  ;;  %v202_v5 = vld [vmem:[#allocation5 + $0x2f8] sm:$0xff]  ;;  %v1236_v9 = vpack.c.bf16 %v200_v3, %v196_v2  ;;  %v199_v10 = vld [vmem:[#allocation5 + $0x2e0] sm:$0xff]  ;;  %v197_v11 = vld [vmem:[#allocation5 + $0x2d0] sm:$0xff] }
  0x45   :  { %v201_v12 = vld [vmem:[#allocation5 + $0x2f0] sm:$0xff]  ;;  %v1364_v13 = vpack.c.bf16 %v202_v5, %v198_v4  ;;  %v204_v14 = vld [vmem:[#allocation5 + $0x308] sm:$0xff]  ;;  %v206_v17 = vld [vmem:[#allocation5 + $0x318] sm:$0xff]  ;;  %v1238_v19 = vpack.c.bf16 %v199_v10, %v195_v7 }
  0x46   :  { %1223 = vmatpush1.bf16.msra.mxu0 %v1222_v34  ;;  %v208_v15 = vld [vmem:[#allocation5 + $0x328] sm:$0xff]  ;;  %v210_v18 = vld [vmem:[#allocation5 + $0x338] sm:$0xff]  ;;  %v1366_v20 = vpack.c.bf16 %v201_v12, %v197_v11  ;;  %v203_v22 = vld [vmem:[#allocation5 + $0x300] sm:$0xff] }
  0x47   :  { %1351 = vmatpush1.bf16.msra.mxu1 %v1350_v35  ;;  %1225 = vmatprep.subr.bf16.mxu0 %v1224_v36  ;;  %v44_v16 = vld [vmem:[#allocation3 + $0x8] sm:$0xff]  ;;  %v1240_v21 = vpack.c.bf16 %v208_v15, %v204_v14  ;;  %v207_v23 = vld [vmem:[#allocation5 + $0x320] sm:$0xff]  ;;  %v205_v24 = vld [vmem:[#allocation5 + $0x310] sm:$0xff]  ;;  %v1368_v25 = vpack.c.bf16 %v210_v18, %v206_v17 }
  0x48   :  { %1353 = vmatprep.subr.bf16.mxu1 %v1352_v40  ;;  %427 = vmatprep.mubr.f32.mxu0 %v44_v16  ;;  %v209_v26 = vld [vmem:[#allocation5 + $0x330] sm:$0xff]  ;;  %v212_v27 = vld [vmem:[#allocation5 + $0x348] sm:$0xff]  ;;  %v214_v29 = vld [vmem:[#allocation5 + $0x358] sm:$0xff]  ;;  %v1242_v31 = vpack.c.bf16 %v207_v23, %v203_v22 }
  0x49   :  { %749 = vmatprep.mubr.f32.mxu1 %v44_v16  ;;  %v216_v28 = vld [vmem:[#allocation5 + $0x368] sm:$0xff]  ;;  %v218_v30 = vld [vmem:[#allocation5 + $0x378] sm:$0xff]  ;;  %v1370_v32 = vpack.c.bf16 %v209_v26, %v205_v24  ;;  %v211_v34 = vld [vmem:[#allocation5 + $0x340] sm:$0xff] }
  0x4a   :  { %1227 = vmatpush1.bf16.msra.mxu0 %v1226_v46  ;;  %v1244_v33 = vpack.c.bf16 %v216_v28, %v212_v27  ;;  %v215_v35 = vld [vmem:[#allocation5 + $0x360] sm:$0xff]  ;;  %v213_v36 = vld [vmem:[#allocation5 + $0x350] sm:$0xff]  ;;  %v1372_v37 = vpack.c.bf16 %v218_v30, %v214_v29  ;;  %v220_v39 = vld [vmem:[#allocation5 + $0x388] sm:$0xff] }
  0x4b   :  { %1355 = vmatpush1.bf16.msra.mxu1 %v1354_v47  ;;  %1229 = vmatprep.subr.bf16.mxu0 %v1228_v48  ;;  %v217_v38 = vld [vmem:[#allocation5 + $0x370] sm:$0xff]  ;;  %v224_v40 = vld [vmem:[#allocation5 + $0x3a8] sm:$0xff]  ;;  %v222_v41 = vld [vmem:[#allocation5 + $0x398] sm:$0xff]  ;;  %v1246_v43 = vpack.c.bf16 %v215_v35, %v211_v34 }
  0x4c   :  { %1357 = vmatprep.subr.bf16.mxu1 %v1356_v52  ;;  %v226_v42 = vld [vmem:[#allocation5 + $0x3b8] sm:$0xff]  ;;  %v1374_v44 = vpack.c.bf16 %v217_v38, %v213_v36  ;;  %v1248_v45 = vpack.c.bf16 %v224_v40, %v220_v39  ;;  %v219_v46 = vld [vmem:[#allocation5 + $0x380] sm:$0xff]  ;;  %v221_v48 = vld [vmem:[#allocation5 + $0x390] sm:$0xff] }
  0x4d   :  { %v223_v47 = vld [vmem:[#allocation5 + $0x3a0] sm:$0xff]  ;;  %v1376_v49 = vpack.c.bf16 %v226_v42, %v222_v41  ;;  %v225_v50 = vld [vmem:[#allocation5 + $0x3b0] sm:$0xff]  ;;  %v228_v51 = vld [vmem:[#allocation5 + $0x3c8] sm:$0xff] }
  0x4e   :  { %1231 = vmatpush1.bf16.msra.mxu0 %v1230_v58  ;;  %v232_v52 = vld [vmem:[#allocation5 + $0x3e8] sm:$0xff]  ;;  %v230_v53 = vld [vmem:[#allocation5 + $0x3d8] sm:$0xff]  ;;  %v1250_v55 = vpack.c.bf16 %v223_v47, %v219_v46  ;;  %v1378_v56 = vpack.c.bf16 %v225_v50, %v221_v48  ;;  %v227_v58 = vld [vmem:[#allocation5 + $0x3c0] sm:$0xff] }
  0x4f   :  { %1359 = vmatpush1.bf16.msra.mxu1 %v1358_v59  ;;  %1233 = vmatprep.subr.bf16.mxu0 %v1232_v60  ;;  %v234_v54 = vld [vmem:[#allocation5 + $0x3f8] sm:$0xff]  ;;  %v1252_v57 = vpack.c.bf16 %v232_v52, %v228_v51  ;;  %v231_v59 = vld [vmem:[#allocation5 + $0x3e0] sm:$0xff]  ;;  %v229_v60 = vld [vmem:[#allocation5 + $0x3d0] sm:$0xff] }
  0x50   :  { %1361 = vmatprep.subr.bf16.mxu1 %v1360_v0  ;;  %v1380_v61 = vpack.c.bf16 %v234_v54, %v230_v53  ;;  %v233_v62 = vld [vmem:[#allocation5 + $0x3f0] sm:$0xff]  ;;  %v236_v63 = vld [vmem:[#allocation5 + $0x408] sm:$0xff]  ;;  %v238_v1 = vld [vmem:[#allocation5 + $0x418] sm:$0xff]  ;;  %v1254_v3 = vpack.c.bf16 %v231_v59, %v227_v58 }
  0x51   :  { %v240_v0 = vld [vmem:[#allocation5 + $0x428] sm:$0xff]  ;;  %v242_v2 = vld [vmem:[#allocation5 + $0x438] sm:$0xff]  ;;  %v1382_v4 = vpack.c.bf16 %v233_v62, %v229_v60  ;;  %v239_v7 = vld [vmem:[#allocation5 + $0x420] sm:$0xff] }
  0x52   :  { %1235 = vmatpush1.bf16.msra.mxu0 %v1234_v6  ;;  %v1256_v5 = vpack.c.bf16 %v240_v0, %v236_v63  ;;  %v235_v6 = vld [vmem:[#allocation5 + $0x400] sm:$0xff]  ;;  %v241_v10 = vld [vmem:[#allocation5 + $0x430] sm:$0xff]  ;;  %v244_v11 = vld [vmem:[#allocation5 + $0x448] sm:$0xff] }
  0x53   :  { %1363 = vmatpush1.bf16.msra.mxu1 %v1362_v8  ;;  %1237 = vmatprep.subr.bf16.mxu0 %v1236_v9  ;;  %v1384_v8 = vpack.c.bf16 %v242_v2, %v238_v1  ;;  %v237_v9 = vld [vmem:[#allocation5 + $0x410] sm:$0xff]  ;;  %v248_v12 = vld [vmem:[#allocation5 + $0x468] sm:$0xff]  ;;  %v1258_v14 = vpack.c.bf16 %v239_v7, %v235_v6  ;;  %v246_v15 = vld [vmem:[#allocation5 + $0x458] sm:$0xff] }
  0x54   :  { %1365 = vmatprep.subr.bf16.mxu1 %v1364_v13  ;;  %v1613_v13 = vld [vmem:[#allocation3] sm:$0xff]  ;;  %v250_v16 = vld [vmem:[#allocation5 + $0x478] sm:$0xff]  ;;  %v1386_v17 = vpack.c.bf16 %v241_v10, %v237_v9  ;;  %v245_v22 = vld [vmem:[#allocation5 + $0x450] sm:$0xff] }
  0x55   :  { %v243_v18 = vld [vmem:[#allocation5 + $0x440] sm:$0xff]  ;;  %v249_v23 = vld [vmem:[#allocation5 + $0x470] sm:$0xff]  ;;  %v1388_v24 = vpack.c.bf16 %v250_v16, %v246_v15  ;;  %v256_v26 = vld [vmem:[#allocation5 + $0x4a8] sm:$0xff] }
  0x56   :  { %1239 = vmatpush1.bf16.msra.mxu0 %v1238_v19  ;;  %v247_v19 = vld [vmem:[#allocation5 + $0x460] sm:$0xff]  ;;  %v254_v29 = vld [vmem:[#allocation5 + $0x498] sm:$0xff]  ;;  %v1623_v34 = vld [vmem:[#allocation3 + $0x48] sm:$0xff] }
  0x57   :  { %1367 = vmatpush1.bf16.msra.mxu1 %v1366_v20  ;;  %1241 = vmatprep.subr.bf16.mxu0 %v1240_v21  ;;  %v1615_v20 = vld [vmem:[#allocation3 + $0x28] sm:$0xff]  ;;  %v1260_v21 = vpack.c.bf16 %v248_v12, %v244_v11  ;;  %v1619_v27 = vld [vmem:[#allocation3 + $0x20] sm:$0xff]  ;;  %v1262_v28 = vpack.c.bf16 %v247_v19, %v243_v18  ;;  %v258_v30 = vld [vmem:[#allocation5 + $0x4b8] sm:$0xff] }
  0x58   :  { %1369 = vmatprep.subr.bf16.mxu1 %v1368_v25  ;;  %v252_v25 = vld [vmem:[#allocation5 + $0x488] sm:$0xff]  ;;  %v253_v36 = vld [vmem:[#allocation5 + $0x490] sm:$0xff]  ;;  %v1392_v38 = vpack.c.bf16 %v258_v30, %v254_v29  ;;  %v1627_v41 = vld [vmem:[#allocation3 + $0x40] sm:$0xff] }
  0x59   :  { %v1264_v35 = vpack.c.bf16 %v256_v26, %v252_v25  ;;  %v260_v39 = vld [vmem:[#allocation5 + $0x4c8] sm:$0xff]  ;;  %v259_v46 = vld [vmem:[#allocation5 + $0x4c0] sm:$0xff]  ;;  %v261_v50 = vld [vmem:[#allocation5 + $0x4d0] sm:$0xff] }
  0x5a   :  { %1243 = vmatpush1.bf16.msra.mxu0 %v1242_v31  ;;  %v1390_v31 = vpack.c.bf16 %v249_v23, %v245_v22  ;;  %v264_v40 = vld [vmem:[#allocation5 + $0x4e8] sm:$0xff]  ;;  %v263_v47 = vld [vmem:[#allocation5 + $0x4e0] sm:$0xff]  ;;  %v265_v51 = vld [vmem:[#allocation5 + $0x4f0] sm:$0xff] }
  0x5b   :  { %1371 = vmatpush1.bf16.msra.mxu1 %v1370_v32  ;;  %1245 = vmatprep.subr.bf16.mxu0 %v1244_v33  ;;  %v251_v32 = vld [vmem:[#allocation5 + $0x480] sm:$0xff]  ;;  %v1631_v48 = vld [vmem:[#allocation3 + $0x68] sm:$0xff]  ;;  %v274_v58 = vld [vmem:[#allocation5 + $0x538] sm:$0xff]  ;;  %v1398_v59 = vpack.c.bf16 %v265_v51, %v261_v50 }
  0x5c   :  { %1373 = vmatprep.subr.bf16.mxu1 %v1372_v37  ;;  %v255_v33 = vld [vmem:[#allocation5 + $0x4a0] sm:$0xff]  ;;  %v257_v37 = vld [vmem:[#allocation5 + $0x4b0] sm:$0xff]  ;;  %v268_v53 = vld [vmem:[#allocation5 + $0x508] sm:$0xff] }
  0x5d   :  { %v1266_v42 = vpack.c.bf16 %v255_v33, %v251_v32  ;;  %v272_v54 = vld [vmem:[#allocation5 + $0x528] sm:$0xff]  ;;  %v267_v60 = vld [vmem:[#allocation5 + $0x500] sm:$0xff]  ;;  %v269_v0 = vld [vmem:[#allocation5 + $0x510] sm:$0xff] }
  0x5e   :  { %1247 = vmatpush1.bf16.msra.mxu0 %v1246_v43  ;;  %v262_v43 = vld [vmem:[#allocation5 + $0x4d8] sm:$0xff]  ;;  %v1639_v62 = vld [vmem:[#allocation3 + $0x88] sm:$0xff]  ;;  %v1272_v63 = vpack.c.bf16 %v272_v54, %v268_v53  ;;  %v273_v1 = vld [vmem:[#allocation5 + $0x530] sm:$0xff] }
  0x5f   :  { %1375 = vmatpush1.bf16.msra.mxu1 %v1374_v44  ;;  %1249 = vmatprep.subr.bf16.mxu0 %v1248_v45  ;;  %v266_v44 = vld [vmem:[#allocation5 + $0x4f8] sm:$0xff]  ;;  %v1394_v45 = vpack.c.bf16 %v257_v37, %v253_v36  ;;  %v1402_v9 = vpack.c.bf16 %v273_v1, %v269_v0  ;;  %v275_v10 = vld [vmem:[#allocation5 + $0x540] sm:$0xff]  ;;  %v1647_v12 = vld [vmem:[#allocation3 + $0xa8] sm:$0xff] }
  0x60   :  { %1377 = vmatprep.subr.bf16.mxu1 %v1376_v49  ;;  %v1268_v49 = vpack.c.bf16 %v264_v40, %v260_v39  ;;  %v1396_v52 = vpack.c.bf16 %v266_v44, %v262_v43  ;;  %v278_v7 = vld [vmem:[#allocation5 + $0x558] sm:$0xff]  ;;  %v279_v11 = vld [vmem:[#allocation5 + $0x560] sm:$0xff]  ;;  %v277_v15 = vld [vmem:[#allocation5 + $0x550] sm:$0xff] }
  0x61   :  { %v281_v16 = vld [vmem:[#allocation5 + $0x570] sm:$0xff]  ;;  %v284_v18 = vld [vmem:[#allocation5 + $0x588] sm:$0xff]  ;;  %v1278_v22 = vpack.c.bf16 %v279_v11, %v275_v10  ;;  %v286_v23 = vld [vmem:[#allocation5 + $0x598] sm:$0xff] }
  0x62   :  { %1251 = vmatpush1.bf16.msra.mxu0 %v1250_v55  ;;  %v1635_v55 = vld [vmem:[#allocation3 + $0x60] sm:$0xff]  ;;  %v288_v19 = vld [vmem:[#allocation5 + $0x5a8] sm:$0xff]  ;;  %v1406_v25 = vpack.c.bf16 %v281_v16, %v277_v15  ;;  %v289_v32 = vld [vmem:[#allocation5 + $0x5b0] sm:$0xff] }
  0x63   :  { %1379 = vmatpush1.bf16.msra.mxu1 %v1378_v56  ;;  %1253 = vmatprep.subr.bf16.mxu0 %v1252_v57  ;;  %v1270_v56 = vpack.c.bf16 %v263_v47, %v259_v46  ;;  %v270_v57 = vld [vmem:[#allocation5 + $0x518] sm:$0xff]  ;;  %v283_v26 = vld [vmem:[#allocation5 + $0x580] sm:$0xff]  ;;  %v1655_v29 = vld [vmem:[#allocation3 + $0xc8] sm:$0xff]  ;;  %v1280_v30 = vpack.c.bf16 %v288_v19, %v284_v18 }
  0x64   :  { %1381 = vmatprep.subr.bf16.mxu1 %v1380_v61  ;;  %v271_v61 = vld [vmem:[#allocation5 + $0x520] sm:$0xff]  ;;  %v1400_v2 = vpack.c.bf16 %v274_v58, %v270_v57  ;;  %v296_v36 = vld [vmem:[#allocation5 + $0x5e8] sm:$0xff]  ;;  %v294_v39 = vld [vmem:[#allocation5 + $0x5d8] sm:$0xff] }
  0x65   :  { %v1274_v6 = vpack.c.bf16 %v271_v61, %v267_v60  ;;  %v1659_v37 = vld [vmem:[#allocation3 + $0xc0] sm:$0xff]  ;;  %v298_v40 = vld [vmem:[#allocation5 + $0x5f8] sm:$0xff]  ;;  %v293_v47 = vld [vmem:[#allocation5 + $0x5d0] sm:$0xff] }
  0x66   :  { %1255 = vmatpush1.bf16.msra.mxu0 %v1254_v3  ;;  %v276_v3 = vld [vmem:[#allocation5 + $0x548] sm:$0xff]  ;;  %v291_v43 = vld [vmem:[#allocation5 + $0x5c0] sm:$0xff]  ;;  %v1412_v50 = vpack.c.bf16 %v298_v40, %v294_v39  ;;  %v306_v57 = vld [vmem:[#allocation5 + $0x638] sm:$0xff] }
  0x67   :  { %1383 = vmatpush1.bf16.msra.mxu1 %v1382_v4  ;;  %1257 = vmatprep.subr.bf16.mxu0 %v1256_v5  ;;  %v280_v4 = vld [vmem:[#allocation5 + $0x568] sm:$0xff]  ;;  %v1643_v5 = vld [vmem:[#allocation3 + $0x80] sm:$0xff]  ;;  %v301_v0 = vld [vmem:[#allocation5 + $0x610] sm:$0xff] }
  0x68   :  { %1385 = vmatprep.subr.bf16.mxu1 %v1384_v8  ;;  %v282_v8 = vld [vmem:[#allocation5 + $0x578] sm:$0xff]  ;;  %v295_v44 = vld [vmem:[#allocation5 + $0x5e0] sm:$0xff]  ;;  %v300_v51 = vld [vmem:[#allocation5 + $0x608] sm:$0xff] }
  0x69   :  { %428 = vmatmul.mubr.f32.vlgmr.msra.gmra.mrb[0].mxu0 %v1613_v13  ;;  %v1667_v53 = vld [vmem:[#allocation3 + $0xe0] sm:$0xff]  ;;  %v1286_v54 = vpack.c.bf16 %v295_v44, %v291_v43  ;;  %v1671_v61 = vld [vmem:[#allocation3 + $0x108] sm:$0xff]  ;;  %v305_v1 = vld [vmem:[#allocation5 + $0x630] sm:$0xff] }
  0x6a   :  { %750 = vmatmul.mubr.f32.vlgmr.msra.gmra.mrb[0].mxu1 %v1613_v13  ;;  %1259 = vmatpush1.bf16.msra.mxu0 %v1258_v14  ;;  %v1276_v14 = vpack.c.bf16 %v280_v4, %v276_v3  ;;  %v303_v60 = vld [vmem:[#allocation5 + $0x620] sm:$0xff]  ;;  %v308_v3 = vld [vmem:[#allocation5 + $0x648] sm:$0xff]  ;;  %v1418_v10 = vpack.c.bf16 %v305_v1, %v301_v0  ;;  %v313_v18 = vld [vmem:[#allocation5 + $0x670] sm:$0xff] }
  0x6b   :  { %1387 = vmatpush1.bf16.msra.mxu1 %v1386_v17  ;;  %433 = vmatprep.mubr.f32.mxu0 %v1615_v20  ;;  %v1404_v17 = vpack.c.bf16 %v282_v8, %v278_v7  ;;  %v312_v4 = vld [vmem:[#allocation5 + $0x668] sm:$0xff]  ;;  %v310_v8 = vld [vmem:[#allocation5 + $0x658] sm:$0xff]  ;;  %v307_v11 = vld [vmem:[#allocation5 + $0x640] sm:$0xff] }
  0x6c   :  { %755 = vmatprep.mubr.f32.mxu1 %v1615_v20  ;;  %1261 = vmatprep.subr.bf16.mxu0 %v1260_v21  ;;  %v1651_v21 = vld [vmem:[#allocation3 + $0xa0] sm:$0xff]  ;;  %v1679_v15 = vld [vmem:[#allocation3 + $0x128] sm:$0xff]  ;;  %v1292_v16 = vpack.c.bf16 %v312_v4, %v308_v3  ;;  %v334_v1 = vld [vmem:[#allocation5 + $0x718] sm:$0xff] }
  0x6d   :  { %434 = vmatmul.mubr.f32.gmra.mrb[2].mxu0 %v1619_v27  ;;  %1389 = vmatprep.subr.bf16.mxu1 %v1388_v24  ;;  %v290_v24 = vld [vmem:[#allocation5 + $0x5b8] sm:$0xff]  ;;  %v324_v40 = vld [vmem:[#allocation5 + $0x6c8] sm:$0xff]  ;;  %v1691_v43 = vld [vmem:[#allocation3 + $0x140] sm:$0xff] }
  0x6e   :  { %756 = vmatmul.mubr.f32.gmra.mrb[2].mxu1 %v1619_v27  ;;  %1263 = vmatpush1.bf16.msra.mxu0 %v1262_v28  ;;  %v287_v28 = vld [vmem:[#allocation5 + $0x5a0] sm:$0xff]  ;;  %v1408_v33 = vpack.c.bf16 %v290_v24, %v286_v23  ;;  %v320_v23 = vld [vmem:[#allocation5 + $0x6a8] sm:$0xff] }
  0x6f   :  { %1391 = vmatpush1.bf16.msra.mxu1 %v1390_v31  ;;  %439 = vmatprep.mubr.f32.mxu0 %v1623_v34  ;;  %v285_v31 = vld [vmem:[#allocation5 + $0x590] sm:$0xff]  ;;  %v1683_v24 = vld [vmem:[#allocation3 + $0x120] sm:$0xff] }
  0x70   :  { %761 = vmatprep.mubr.f32.mxu1 %v1623_v34  ;;  %1265 = vmatprep.subr.bf16.mxu0 %v1264_v35  ;;  %v292_v35 = vld [vmem:[#allocation5 + $0x5c8] sm:$0xff]  ;;  %v331_v4 = vld [vmem:[#allocation5 + $0x700] sm:$0xff] }
  0x71   :  { %440 = vmatmul.mubr.f32.gmra.mrb[4].mxu0 %v1627_v41  ;;  %1393 = vmatprep.subr.bf16.mxu1 %v1392_v38  ;;  %v1282_v38 = vpack.c.bf16 %v287_v28, %v283_v26  ;;  %v1284_v46 = vpack.c.bf16 %v296_v36, %v292_v35  ;;  %v318_v26 = vld [vmem:[#allocation5 + $0x698] sm:$0xff]  ;;  %v317_v36 = vld [vmem:[#allocation5 + $0x690] sm:$0xff] }
  0x72   :  { %762 = vmatmul.mubr.f32.gmra.mrb[4].mxu1 %v1627_v41  ;;  %1267 = vmatpush1.bf16.msra.mxu0 %v1266_v42  ;;  %v1410_v42 = vpack.c.bf16 %v289_v32, %v285_v31  ;;  %v322_v28 = vld [vmem:[#allocation5 + $0x6b8] sm:$0xff]  ;;  %v315_v31 = vld [vmem:[#allocation5 + $0x680] sm:$0xff] }
  0x73   :  { %1395 = vmatpush1.bf16.msra.mxu1 %v1394_v45  ;;  %445 = vmatprep.mubr.f32.mxu0 %v1631_v48  ;;  %v1663_v45 = vld [vmem:[#allocation3 + $0xe8] sm:$0xff]  ;;  %v319_v32 = vld [vmem:[#allocation5 + $0x6a0] sm:$0xff]  ;;  %v1424_v39 = vpack.c.bf16 %v322_v28, %v318_v26 }
  0x74   :  { %767 = vmatprep.mubr.f32.mxu1 %v1631_v48  ;;  %1269 = vmatprep.subr.bf16.mxu0 %v1268_v49  ;;  %v297_v49 = vld [vmem:[#allocation5 + $0x5f0] sm:$0xff]  ;;  %v1298_v44 = vpack.c.bf16 %v319_v32, %v315_v31  ;;  %v339_v26 = vld [vmem:[#allocation5 + $0x740] sm:$0xff] }
  0x75   :  { %446 = vmatmul.mubr.f32.gmra.mrb[6].mxu0 %v1635_v55  ;;  %1397 = vmatprep.subr.bf16.mxu1 %v1396_v52  ;;  %v304_v52 = vld [vmem:[#allocation5 + $0x628] sm:$0xff]  ;;  %v1414_v58 = vpack.c.bf16 %v297_v49, %v293_v47  ;;  %v330_v47 = vld [vmem:[#allocation5 + $0x6f8] sm:$0xff]  ;;  %v343_v28 = vld [vmem:[#allocation5 + $0x760] sm:$0xff] }
  0x76   :  { %768 = vmatmul.mubr.f32.gmra.mrb[6].mxu1 %v1635_v55  ;;  %1271 = vmatpush1.bf16.msra.mxu0 %v1270_v56  ;;  %v302_v56 = vld [vmem:[#allocation5 + $0x618] sm:$0xff]  ;;  %v341_v32 = vld [vmem:[#allocation5 + $0x750] sm:$0xff] }
  0x77   :  { %1399 = vmatpush1.bf16.msra.mxu1 %v1398_v59  ;;  %451 = vmatprep.mubr.f32.mxu0 %v1639_v62  ;;  %v299_v59 = vld [vmem:[#allocation5 + $0x600] sm:$0xff] }
  0x78   :  { %773 = vmatprep.mubr.f32.mxu1 %v1639_v62  ;;  %1273 = vmatprep.subr.bf16.mxu0 %v1272_v63  ;;  %v1288_v63 = vpack.c.bf16 %v304_v52, %v300_v51  ;;  %v1290_v7 = vpack.c.bf16 %v303_v60, %v299_v59  ;;  %v327_v51 = vld [vmem:[#allocation5 + $0x6e0] sm:$0xff]  ;;  %v1695_v52 = vld [vmem:[#allocation3 + $0x168] sm:$0xff] }
  0x79   :  { %452 = vmatmul.mubr.f32.gmra.mrb[8].mxu0 %v1643_v5  ;;  %1401 = vmatprep.subr.bf16.mxu1 %v1400_v2  ;;  %v1416_v2 = vpack.c.bf16 %v306_v57, %v302_v56  ;;  %v325_v56 = vld [vmem:[#allocation5 + $0x6d0] sm:$0xff]  ;;  %v332_v59 = vld [vmem:[#allocation5 + $0x708] sm:$0xff] }
  0x7a   :  { %774 = vmatmul.mubr.f32.gmra.mrb[8].mxu1 %v1643_v5  ;;  %1275 = vmatpush1.bf16.msra.mxu0 %v1274_v6  ;;  %v1675_v6 = vld [vmem:[#allocation3 + $0x100] sm:$0xff]  ;;  %v329_v57 = vld [vmem:[#allocation5 + $0x6f0] sm:$0xff]  ;;  %v336_v60 = vld [vmem:[#allocation5 + $0x728] sm:$0xff] }
  0x7b   :  { %1403 = vmatpush1.bf16.msra.mxu1 %v1402_v9  ;;  %457 = vmatprep.mubr.f32.mxu0 %v1647_v12  ;;  %v314_v9 = vld [vmem:[#allocation5 + $0x678] sm:$0xff]  ;;  %v1430_v3 = vpack.c.bf16 %v329_v57, %v325_v56  ;;  %v349_v56 = vld [vmem:[#allocation5 + $0x790] sm:$0xff] }
  0x7c   :  { %779 = vmatprep.mubr.f32.mxu1 %v1647_v12  ;;  %1277 = vmatprep.subr.bf16.mxu0 %v1276_v14  ;;  %v311_v14 = vld [vmem:[#allocation5 + $0x660] sm:$0xff]  ;;  %v1420_v19 = vpack.c.bf16 %v314_v9, %v310_v8  ;;  %v1703_v8 = vld [vmem:[#allocation3 + $0x188] sm:$0xff]  ;;  %v1304_v9 = vpack.c.bf16 %v336_v60, %v332_v59  ;;  %v353_v57 = vld [vmem:[#allocation5 + $0x7b0] sm:$0xff] }
  0x7d   :  { %458 = vmatmul.mubr.f32.gmra.mrb[10].mxu0 %v1651_v21  ;;  %1405 = vmatprep.subr.bf16.mxu1 %v1404_v17  ;;  %v309_v17 = vld [vmem:[#allocation5 + $0x650] sm:$0xff]  ;;  %2016 = vst [vmem:[#allocation9_spill] sm:$0xff] %v1703_v8  ;;  %v356_v59 = vld [vmem:[#allocation5 + $0x7c8] sm:$0xff] }
  0x7e   :  { %780 = vmatmul.mubr.f32.gmra.mrb[10].mxu1 %v1651_v21  ;;  %1279 = vmatpush1.bf16.msra.mxu0 %v1278_v22  ;;  %v316_v22 = vld [vmem:[#allocation5 + $0x688] sm:$0xff] }
  0x7f   :  { %1407 = vmatpush1.bf16.msra.mxu1 %v1406_v25  ;;  %463 = vmatprep.mubr.f32.mxu0 %v1655_v29  ;;  %v1294_v25 = vpack.c.bf16 %v311_v14, %v307_v11  ;;  %v1296_v35 = vpack.c.bf16 %v320_v23, %v316_v22  ;;  %v337_v11 = vld [vmem:[#allocation5 + $0x730] sm:$0xff]  ;;  %v342_v22 = vld [vmem:[#allocation5 + $0x758] sm:$0xff]  ;;  %v360_v60 = vld [vmem:[#allocation5 + $0x7e8] sm:$0xff] }
  0x80   :  { %785 = vmatprep.mubr.f32.mxu1 %v1655_v29  ;;  %1281 = vmatprep.subr.bf16.mxu0 %v1280_v30  ;;  %v1422_v30 = vpack.c.bf16 %v313_v18, %v309_v17  ;;  %v344_v17 = vld [vmem:[#allocation5 + $0x768] sm:$0xff]  ;;  %v1707_v18 = vld [vmem:[#allocation3 + $0x180] sm:$0xff]  ;;  %v346_v23 = vld [vmem:[#allocation5 + $0x778] sm:$0xff] }
  0x81   :  { %464 = vmatmul.mubr.f32.gmra.mrb[12].mxu0 %v1659_v37  ;;  %1409 = vmatprep.subr.bf16.mxu1 %v1408_v33  ;;  %v1687_v33 = vld [vmem:[#allocation3 + $0x148] sm:$0xff]  ;;  %2017 = vst [vmem:[#allocation10_spill] sm:$0xff] %v1707_v18 }
  0x82   :  { %786 = vmatmul.mubr.f32.gmra.mrb[12].mxu1 %v1659_v37  ;;  %1283 = vmatpush1.bf16.msra.mxu0 %v1282_v38  ;;  %v321_v38 = vld [vmem:[#allocation5 + $0x6b0] sm:$0xff] }
  0x83   :  { %1411 = vmatpush1.bf16.msra.mxu1 %v1410_v42  ;;  %469 = vmatprep.mubr.f32.mxu0 %v1663_v45  ;;  %v328_v42 = vld [vmem:[#allocation5 + $0x6e8] sm:$0xff]  ;;  %v1426_v49 = vpack.c.bf16 %v321_v38, %v317_v36  ;;  %v1436_v36 = vpack.c.bf16 %v346_v23, %v342_v22 }
  0x84   :  { %791 = vmatprep.mubr.f32.mxu1 %v1663_v45  ;;  %1285 = vmatprep.subr.bf16.mxu0 %v1284_v46  ;;  %v326_v46 = vld [vmem:[#allocation5 + $0x6d8] sm:$0xff]  ;;  %v348_v38 = vld [vmem:[#allocation5 + $0x788] sm:$0xff] }
  0x85   :  { %470 = vmatmul.mubr.f32.gmra.mrb[14].mxu0 %v1667_v53  ;;  %1413 = vmatprep.subr.bf16.mxu1 %v1412_v50  ;;  %v323_v50 = vld [vmem:[#allocation5 + $0x6c0] sm:$0xff] }
  0x86   :  { %792 = vmatmul.mubr.f32.gmra.mrb[14].mxu1 %v1667_v53  ;;  %1287 = vmatpush1.bf16.msra.mxu0 %v1286_v54  ;;  %v1300_v54 = vpack.c.bf16 %v328_v42, %v324_v40  ;;  %v1302_v0 = vpack.c.bf16 %v327_v51, %v323_v50  ;;  %v1715_v40 = vld [vmem:[#allocation3 + $0x1a0] sm:$0xff]  ;;  %v1310_v42 = vpack.c.bf16 %v343_v28, %v339_v26  ;;  %v1719_v51 = vld [vmem:[#allocation3 + $0x1c8] sm:$0xff]  ;;  %v1739_v26 = vld [vmem:[#allocation3 + $0x10] sm:$0xff] }
  0x87   :  { %1415 = vmatpush1.bf16.msra.mxu1 %v1414_v58  ;;  %475 = vmatprep.mubr.f32.mxu0 %v1671_v61  ;;  %v1428_v58 = vpack.c.bf16 %v330_v47, %v326_v46  ;;  %2019 = vst [vmem:[#allocation12_spill] sm:$0xff] %v1715_v40  ;;  %v354_v46 = vld [vmem:[#allocation5 + $0x7b8] sm:$0xff]  ;;  %v351_v50 = vld [vmem:[#allocation5 + $0x7a0] sm:$0xff]  ;;  %2020 = vst [vmem:[#allocation13_spill] sm:$0xff] %v1719_v51 }
  0x88   :  { %797 = vmatprep.mubr.f32.mxu1 %v1671_v61  ;;  %1289 = vmatprep.subr.bf16.mxu0 %v1288_v63  ;;  %v1699_v63 = vld [vmem:[#allocation3 + $0x160] sm:$0xff]  ;;  %v1742_v28 = vld [vmem:[#allocation3 + $0x38] sm:$0xff] }
  0x89   :  { %476 = vmatmul.mubr.f32.gmra.mrb[16].mxu0 %v1675_v6  ;;  %1417 = vmatprep.subr.bf16.mxu1 %v1416_v2  ;;  %v338_v2 = vld [vmem:[#allocation5 + $0x738] sm:$0xff] }
  0x8a   :  { %798 = vmatmul.mubr.f32.gmra.mrb[16].mxu1 %v1675_v6  ;;  %1291 = vmatpush1.bf16.msra.mxu0 %v1290_v7  ;;  %v335_v7 = vld [vmem:[#allocation5 + $0x720] sm:$0xff]  ;;  %v1432_v14 = vpack.c.bf16 %v338_v2, %v334_v1  ;;  %v358_v2 = vld [vmem:[#allocation5 + $0x7d8] sm:$0xff] }
  0x8b   :  { %1419 = vmatpush1.bf16.msra.mxu1 %v1418_v10  ;;  %481 = vmatprep.mubr.f32.mxu0 %v1679_v15  ;;  %v333_v10 = vld [vmem:[#allocation5 + $0x710] sm:$0xff] }
  0x8c   :  { %803 = vmatprep.mubr.f32.mxu1 %v1679_v15  ;;  %1293 = vmatprep.subr.bf16.mxu0 %v1292_v16  ;;  %v340_v16 = vld [vmem:[#allocation5 + $0x748] sm:$0xff] }
  0x8d   :  { %482 = vmatmul.mubr.f32.gmra.mrb[18].mxu0 %v1683_v24  ;;  %1421 = vmatprep.subr.bf16.mxu1 %v1420_v19  ;;  %v1306_v19 = vpack.c.bf16 %v335_v7, %v331_v4  ;;  %v1308_v31 = vpack.c.bf16 %v344_v17, %v340_v16  ;;  %v1442_v4 = vpack.c.bf16 %v353_v57, %v349_v56  ;;  %v355_v7 = vld [vmem:[#allocation5 + $0x7c0] sm:$0xff]  ;;  %v361_v16 = vld [vmem:[#allocation5 + $0x7f0] sm:$0xff]  ;;  %v1799_v56 = vld [vmem:[#allocation3 + $0x118] sm:$0xff] }
  0x8e   :  { %804 = vmatmul.mubr.f32.gmra.mrb[18].mxu1 %v1683_v24  ;;  %1295 = vmatpush1.bf16.msra.mxu0 %v1294_v25  ;;  %v1434_v25 = vpack.c.bf16 %v337_v11, %v333_v10  ;;  %v1727_v10 = vld [vmem:[#allocation3 + $0x1e8] sm:$0xff]  ;;  %v1316_v11 = vpack.c.bf16 %v360_v60, %v356_v59  ;;  %v1804_v57 = vld [vmem:[#allocation3 + $0x110] sm:$0xff]  ;;  %v1815_v60 = vld [vmem:[#allocation3 + $0x158] sm:$0xff] }
  0x8f   :  { %1423 = vmatpush1.bf16.msra.mxu1 %v1422_v30  ;;  %487 = vmatprep.mubr.f32.mxu0 %v1687_v33  ;;  %v1711_v30 = vld [vmem:[#allocation3 + $0x1a8] sm:$0xff]  ;;  %2022 = vst [vmem:[#allocation15_spill] sm:$0xff] %v1727_v10  ;;  %v1812_v59 = vld [vmem:[#allocation3 + $0x130] sm:$0xff] }
  0x90   :  { %809 = vmatprep.mubr.f32.mxu1 %v1687_v33  ;;  %1297 = vmatprep.subr.bf16.mxu0 %v1296_v35  ;;  %2018 = vst [vmem:[#allocation11_spill] sm:$0xff] %v1711_v30  ;;  %v345_v35 = vld [vmem:[#allocation5 + $0x770] sm:$0xff] }
  0x91   :  { %488 = vmatmul.mubr.f32.gmra.mrb[20].mxu0 %v1691_v43  ;;  %1425 = vmatprep.subr.bf16.mxu1 %v1424_v39  ;;  %v352_v39 = vld [vmem:[#allocation5 + $0x7a8] sm:$0xff]  ;;  %v1438_v47 = vpack.c.bf16 %v345_v35, %v341_v32  ;;  %v1751_v32 = vld [vmem:[#allocation3 + $0x58] sm:$0xff]  ;;  %v1756_v35 = vld [vmem:[#allocation3 + $0x50] sm:$0xff] }
  0x92   :  { %810 = vmatmul.mubr.f32.gmra.mrb[20].mxu1 %v1691_v43  ;;  %1299 = vmatpush1.bf16.msra.mxu0 %v1298_v44  ;;  %v350_v44 = vld [vmem:[#allocation5 + $0x798] sm:$0xff] }
  0x93   :  { %1427 = vmatpush1.bf16.msra.mxu1 %v1426_v49  ;;  %493 = vmatprep.mubr.f32.mxu0 %v1695_v52  ;;  %v347_v49 = vld [vmem:[#allocation5 + $0x780] sm:$0xff] }
  0x94   :  { %815 = vmatprep.mubr.f32.mxu1 %v1695_v52  ;;  %1301 = vmatprep.subr.bf16.mxu0 %v1300_v54  ;;  %v1312_v54 = vpack.c.bf16 %v352_v39, %v348_v38  ;;  %v1314_v1 = vpack.c.bf16 %v351_v50, %v347_v49  ;;  %v1764_v38 = vld [vmem:[#allocation3 + $0x70] sm:$0xff]  ;;  %v1767_v39 = vld [vmem:[#allocation3 + $0x98] sm:$0xff] }
  0x95   :  { %494 = vmatmul.mubr.f32.gmra.mrb[22].mxu0 %v1699_v63  ;;  %1429 = vmatprep.subr.bf16.mxu1 %v1428_v58  ;;  %v1440_v58 = vpack.c.bf16 %v354_v46, %v350_v44  ;;  %v1775_v44 = vld [vmem:[#allocation3 + $0xb8] sm:$0xff]  ;;  %v1780_v46 = vld [vmem:[#allocation3 + $0xb0] sm:$0xff] }
  0x96   :  { %816 = vmatmul.mubr.f32.gmra.mrb[22].mxu1 %v1699_v63  ;;  %1303 = vmatpush1.bf16.msra.mxu0 %v1302_v0  ;;  %v1723_v0 = vld [vmem:[#allocation3 + $0x1c0] sm:$0xff]  ;;  %v1788_v49 = vld [vmem:[#allocation3 + $0xd0] sm:$0xff]  ;;  %v1791_v50 = vld [vmem:[#allocation3 + $0xf8] sm:$0xff] }
  0x97   :  { %1431 = vmatpush1.bf16.msra.mxu1 %v1430_v3  ;;  %499 = vmatprep.mubr.f32.mxu0 %v1703_v8  ;;  %2021 = vst [vmem:[#allocation14_spill] sm:$0xff] %v1723_v0  ;;  %v362_v3 = vld [vmem:[#allocation5 + $0x7f8] sm:$0xff] }
  0x98   :  { %821 = vmatprep.mubr.f32.mxu1 %v1703_v8  ;;  %1305 = vmatprep.subr.bf16.mxu0 %v1304_v9  ;;  %v359_v9 = vld [vmem:[#allocation5 + $0x7e0] sm:$0xff]  ;;  %v1444_v17 = vpack.c.bf16 %v362_v3, %v358_v2  ;;  %v1823_v2 = vld [vmem:[#allocation3 + $0x178] sm:$0xff]  ;;  %v1828_v3 = vld [vmem:[#allocation3 + $0x170] sm:$0xff] }
  0x99   :  { %500 = vmatmul.mubr.f32.gmra.mrb[24].mxu0 %v1707_v18  ;;  %1433 = vmatprep.subr.bf16.mxu1 %v1432_v14  ;;  %v357_v14 = vld [vmem:[#allocation5 + $0x7d0] sm:$0xff]  ;;  %v1318_v22 = vpack.c.bf16 %v359_v9, %v355_v7  ;;  %2024 = vst [vmem:[#allocation17_spill] sm:$0xff] %v1823_v2  ;;  %v1839_v9 = vld [vmem:[#allocation3 + $0x1b8] sm:$0xff] }
  0x9a   :  { %822 = vmatmul.mubr.f32.gmra.mrb[24].mxu1 %v1707_v18  ;;  %1307 = vmatpush1.bf16.msra.mxu0 %v1306_v19  ;;  %v1731_v19 = vld [vmem:[#allocation3 + $0x1e0] sm:$0xff]  ;;  %v1446_v23 = vpack.c.bf16 %v361_v16, %v357_v14  ;;  %v1836_v7 = vld [vmem:[#allocation3 + $0x190] sm:$0xff]  ;;  %2027 = vst [vmem:[#allocation20_spill] sm:$0xff] %v1839_v9  ;;  %v1847_v14 = vld [vmem:[#allocation3 + $0x1d8] sm:$0xff] }
  0x9b   :  { %1435 = vmatpush1.bf16.msra.mxu1 %v1434_v25  ;;  %505 = vmatprep.mubr.f32.mxu0 %v1711_v30  ;;  %2023 = vst [vmem:[#allocation16_spill] sm:$0xff] %v1731_v19  ;;  %v1735_v25 = vld [vmem:[#allocation3 + $0x18] sm:$0xff]  ;;  %2026 = vst [vmem:[#allocation19_spill] sm:$0xff] %v1836_v7  ;;  %v1852_v16 = vld [vmem:[#allocation3 + $0x1d0] sm:$0xff] }
  0x9c   :  { %827 = vmatprep.mubr.f32.mxu1 %v1711_v30  ;;  %1309 = vmatprep.subr.bf16.mxu0 %v1308_v31  ;;  %v1748_v31 = vld [vmem:[#allocation3 + $0x30] sm:$0xff]  ;;  %2029 = vst [vmem:[#allocation22_spill] sm:$0xff] %v1847_v14  ;;  %2030 = vst [vmem:[#allocation23_spill] sm:$0xff] %v1852_v16 }
  0x9d   :  { %506 = vmatmul.mubr.f32.gmra.mrb[26].mxu0 %v1715_v40  ;;  %1437 = vmatprep.subr.bf16.mxu1 %v1436_v36  ;;  %v1759_v36 = vld [vmem:[#allocation3 + $0x78] sm:$0xff] }
  0x9e   :  { %828 = vmatmul.mubr.f32.gmra.mrb[26].mxu1 %v1715_v40  ;;  %1311 = vmatpush1.bf16.msra.mxu0 %v1310_v42  ;;  %v1772_v42 = vld [vmem:[#allocation3 + $0x90] sm:$0xff] }
  0x9f   :  { %1439 = vmatpush1.bf16.msra.mxu1 %v1438_v47  ;;  %511 = vmatprep.mubr.f32.mxu0 %v1719_v51  ;;  %v1783_v47 = vld [vmem:[#allocation3 + $0xd8] sm:$0xff] }
  0xa0   :  { %833 = vmatprep.mubr.f32.mxu1 %v1719_v51  ;;  %1313 = vmatprep.subr.bf16.mxu0 %v1312_v54  ;;  %v1796_v54 = vld [vmem:[#allocation3 + $0xf0] sm:$0xff]  ;;  %v1516_v51 = vld [vmem:[#allocation3 + $0x8] sm:$0xff] }
  0xa1   :  { %512 = vmatmul.mubr.f32.gmra.mrb[28].mxu0 %v1723_v0  ;;  %1441 = vmatprep.subr.bf16.mxu1 %v1440_v58  ;;  %v1807_v58 = vld [vmem:[#allocation3 + $0x138] sm:$0xff] }
  0xa2   :  { %834 = vmatmul.mubr.f32.gmra.mrb[28].mxu1 %v1723_v0  ;;  %1315 = vmatpush1.bf16.msra.mxu0 %v1314_v1  ;;  %v1820_v1 = vld [vmem:[#allocation3 + $0x150] sm:$0xff] }
  0xa3   :  { %1443 = vmatpush1.bf16.msra.mxu1 %v1442_v4  ;;  %517 = vmatprep.mubr.f32.mxu0 %v1727_v10  ;;  %v1831_v4 = vld [vmem:[#allocation3 + $0x198] sm:$0xff] }
  0xa4   :  { %839 = vmatprep.mubr.f32.mxu1 %v1727_v10  ;;  %1317 = vmatprep.subr.bf16.mxu0 %v1316_v11  ;;  %2025 = vst [vmem:[#allocation18_spill] sm:$0xff] %v1831_v4  ;;  %v1844_v11 = vld [vmem:[#allocation3 + $0x1b0] sm:$0xff] }
  0xa5   :  { %518 = vmatmul.mubr.f32.gmra.mrb[30].mxu0 %v1731_v19  ;;  %1445 = vmatprep.subr.bf16.mxu1 %v1444_v17  ;;  %2028 = vst [vmem:[#allocation21_spill] sm:$0xff] %v1844_v11  ;;  %v1855_v17 = vld [vmem:[#allocation3 + $0x1f8] sm:$0xff] }
  0xa6   :  { %840 = vmatmul.mubr.f32.gmra.mrb[30].mxu1 %v1731_v19  ;;  %1319 = vmatpush1.bf16.msra.mxu0 %v1318_v22  ;;  %2031 = vst [vmem:[#allocation24_spill] sm:$0xff] %v1855_v17  ;;  %v1860_v22 = vld [vmem:[#allocation3 + $0x1f0] sm:$0xff] }
  0xa7   :  { %1447 = vmatpush1.bf16.msra.mxu1 %v1446_v23  ;;  %588 = vmatprep.mubr.f32.mxu0 %v1735_v25  ;;  %2032 = vst [vmem:[#allocation25_spill] sm:$0xff] %v1860_v22 }
  0xa8   :  { %910 = vmatprep.mubr.f32.mxu1 %v1735_v25 }
  0xa9   :  { %589 = vmatmul.mubr.f32.vlgmr.msra.gmra.mrb[0].mxu0 %v1739_v26 }
  0xaa   :  { %911 = vmatmul.mubr.f32.vlgmr.msra.gmra.mrb[0].mxu1 %v1739_v26  ;;  %594 = vmatprep.mubr.f32.mxu0 %v1742_v28 }
  0xab   :  { %916 = vmatprep.mubr.f32.mxu1 %v1742_v28 }
  0xad   :  { %595 = vmatmul.mubr.f32.gmra.mrb[2].mxu0 %v1748_v31 }
  0xae   :  { %917 = vmatmul.mubr.f32.gmra.mrb[2].mxu1 %v1748_v31  ;;  %600 = vmatprep.mubr.f32.mxu0 %v1751_v32 }
  0xaf   :  { %922 = vmatprep.mubr.f32.mxu1 %v1751_v32 }
  0xb1   :  { %601 = vmatmul.mubr.f32.gmra.mrb[4].mxu0 %v1756_v35 }
  0xb2   :  { %923 = vmatmul.mubr.f32.gmra.mrb[4].mxu1 %v1756_v35  ;;  %606 = vmatprep.mubr.f32.mxu0 %v1759_v36 }
  0xb3   :  { %928 = vmatprep.mubr.f32.mxu1 %v1759_v36 }
  0xb5   :  { %607 = vmatmul.mubr.f32.gmra.mrb[6].mxu0 %v1764_v38 }
  0xb6   :  { %929 = vmatmul.mubr.f32.gmra.mrb[6].mxu1 %v1764_v38  ;;  %612 = vmatprep.mubr.f32.mxu0 %v1767_v39 }
  0xb7   :  { %934 = vmatprep.mubr.f32.mxu1 %v1767_v39 }
  0xb9   :  { %613 = vmatmul.mubr.f32.gmra.mrb[8].mxu0 %v1772_v42 }
  0xba   :  { %935 = vmatmul.mubr.f32.gmra.mrb[8].mxu1 %v1772_v42  ;;  %618 = vmatprep.mubr.f32.mxu0 %v1775_v44 }
  0xbb   :  { %940 = vmatprep.mubr.f32.mxu1 %v1775_v44 }
  0xbd   :  { %619 = vmatmul.mubr.f32.gmra.mrb[10].mxu0 %v1780_v46 }
  0xbe   :  { %941 = vmatmul.mubr.f32.gmra.mrb[10].mxu1 %v1780_v46  ;;  %624 = vmatprep.mubr.f32.mxu0 %v1783_v47 }
  0xbf   :  { %946 = vmatprep.mubr.f32.mxu1 %v1783_v47 }
  0xc1   :  { %625 = vmatmul.mubr.f32.gmra.mrb[12].mxu0 %v1788_v49 }
  0xc2   :  { %947 = vmatmul.mubr.f32.gmra.mrb[12].mxu1 %v1788_v49  ;;  %630 = vmatprep.mubr.f32.mxu0 %v1791_v50 }
  0xc3   :  { %952 = vmatprep.mubr.f32.mxu1 %v1791_v50 }
  0xc5   :  { %631 = vmatmul.mubr.f32.gmra.mrb[14].mxu0 %v1796_v54 }
  0xc6   :  { %953 = vmatmul.mubr.f32.gmra.mrb[14].mxu1 %v1796_v54  ;;  %636 = vmatprep.mubr.f32.mxu0 %v1799_v56 }
  0xc7   :  { %958 = vmatprep.mubr.f32.mxu1 %v1799_v56 }
  0xc9   :  { %637 = vmatmul.mubr.f32.gmra.mrb[16].mxu0 %v1804_v57 }
  0xca   :  { %959 = vmatmul.mubr.f32.gmra.mrb[16].mxu1 %v1804_v57  ;;  %642 = vmatprep.mubr.f32.mxu0 %v1807_v58 }
  0xcb   :  { %964 = vmatprep.mubr.f32.mxu1 %v1807_v58 }
  0xcd   :  { %643 = vmatmul.mubr.f32.gmra.mrb[18].mxu0 %v1812_v59 }
  0xce   :  { %965 = vmatmul.mubr.f32.gmra.mrb[18].mxu1 %v1812_v59  ;;  %648 = vmatprep.mubr.f32.mxu0 %v1815_v60 }
  0xcf   :  { %970 = vmatprep.mubr.f32.mxu1 %v1815_v60 }
  0xd1   :  { %649 = vmatmul.mubr.f32.gmra.mrb[20].mxu0 %v1820_v1 }
  0xd2   :  { %971 = vmatmul.mubr.f32.gmra.mrb[20].mxu1 %v1820_v1  ;;  %654 = vmatprep.mubr.f32.mxu0 %v1823_v2 }
  0xd3   :  { %976 = vmatprep.mubr.f32.mxu1 %v1823_v2 }
  0xd5   :  { %655 = vmatmul.mubr.f32.gmra.mrb[22].mxu0 %v1828_v3 }
  0xd6   :  { %977 = vmatmul.mubr.f32.gmra.mrb[22].mxu1 %v1828_v3  ;;  %660 = vmatprep.mubr.f32.mxu0 %v1831_v4 }
  0xd7   :  { %982 = vmatprep.mubr.f32.mxu1 %v1831_v4 }
  0xd9   :  { %661 = vmatmul.mubr.f32.gmra.mrb[24].mxu0 %v1836_v7 }
  0xda   :  { %983 = vmatmul.mubr.f32.gmra.mrb[24].mxu1 %v1836_v7  ;;  %666 = vmatprep.mubr.f32.mxu0 %v1839_v9 }
  0xdb   :  { %988 = vmatprep.mubr.f32.mxu1 %v1839_v9 }
  0xdd   :  { %667 = vmatmul.mubr.f32.gmra.mrb[26].mxu0 %v1844_v11 }
  0xde   :  { %989 = vmatmul.mubr.f32.gmra.mrb[26].mxu1 %v1844_v11  ;;  %672 = vmatprep.mubr.f32.mxu0 %v1847_v14 }
  0xdf   :  { %994 = vmatprep.mubr.f32.mxu1 %v1847_v14 }
  0xe1   :  { %673 = vmatmul.mubr.f32.gmra.mrb[28].mxu0 %v1852_v16 }
  0xe2   :  { %995 = vmatmul.mubr.f32.gmra.mrb[28].mxu1 %v1852_v16  ;;  %678 = vmatprep.mubr.f32.mxu0 %v1855_v17 }
  0xe3   :  { %1000 = vmatprep.mubr.f32.mxu1 %v1855_v17 }
  0xe5   :  { %679 = vmatmul.mubr.f32.gmra.mrb[30].mxu0 %v1860_v22 }
  0xe6   :  { %1001 = vmatmul.mubr.f32.gmra.mrb[30].mxu1 %v1860_v22 }
 0x17c   :  { %v590_v23 = vpop.f32.mrb[0].mxu0 }
 0x17d   :  { %v1007_v10 = vmul.f32 %v590_v23, %v1613_v13  ;;  %v912_v14 = vpop.f32.mrb[0].mxu1  ;;  %v592_v19 = vpop.f32.mrb[1].mxu0 }
 0x17e   :  { %v1008_v9 = vmul.f32 %v1516_v51, %v592_v19  ;;  %v914_v0 = vpop.f32.mrb[1].mxu1  ;;  %v1009_v16 = vmul.f32 %v912_v14, %v1739_v26 }
 0x17f   :  { %v1010_v7 = vmul.f32 %v914_v0, %v1735_v25 }
 0x180   :  { %v1071_v11 = vadd.f32 %v1008_v9, %v1007_v10  ;;  %v596_v30 = vpop.f32.mrb[2].mxu0 }
 0x181   :  { %v1011_v4 = vmul.f32 %v596_v30, %v1619_v27  ;;  %v918_v40 = vpop.f32.mrb[2].mxu1  ;;  %v598_v17 = vpop.f32.mrb[3].mxu0 }
 0x182   :  { %v1012_v22 = vmul.f32 %v598_v17, %v1615_v20  ;;  %v920_v8 = vpop.f32.mrb[3].mxu1  ;;  %v1072_v2 = vadd.f32 %v1071_v11, %v1009_v16  ;;  %v1013_v13 = vmul.f32 %v918_v40, %v1748_v31 }
 0x183   :  { %v1014_v9 = vmul.f32 %v920_v8, %v1742_v28 }
 0x184   :  { %v1076_v23 = vadd.f32 %v1012_v22, %v1011_v4  ;;  %v602_v18 = vpop.f32.mrb[4].mxu0  ;;  %v1073_v51 = vadd.f32 %v1072_v2, %v1010_v7 }
 0x185   :  { %v1015_v19 = vmul.f32 %v602_v18, %v1627_v41  ;;  %v924_v26 = vpop.f32.mrb[4].mxu1  ;;  %v604_v10 = vpop.f32.mrb[5].mxu0 }
 0x186   :  { %v1016_v27 = vmul.f32 %v604_v10, %v1623_v34  ;;  %v926_v30 = vpop.f32.mrb[5].mxu1  ;;  %1074 = vadd.xlane.f32.xlu0 %v1073_v51  ;;  %v1077_v0 = vadd.f32 %v1076_v23, %v1013_v13  ;;  %v1017_v20 = vmul.f32 %v924_v26, %v1756_v35 }
 0x187   :  { %v1018_v41 = vmul.f32 %v926_v30, %v1751_v32 }
 0x188   :  { %v1081_v25 = vadd.f32 %v1016_v27, %v1015_v19  ;;  %v608_v11 = vpop.f32.mrb[6].mxu0  ;;  %v1078_v14 = vadd.f32 %v1077_v0, %v1014_v9 }
 0x189   :  { %v1019_v40 = vmul.f32 %v608_v11, %v1635_v55  ;;  %v930_v31 = vpop.f32.mrb[6].mxu1  ;;  %v610_v2 = vpop.f32.mrb[7].mxu0 }
 0x18a   :  { %v1020_v18 = vmul.f32 %v610_v2, %v1631_v48  ;;  %v932_v4 = vpop.f32.mrb[7].mxu1  ;;  %1079 = vadd.xlane.f32.xlu0 %v1078_v14  ;;  %v1082_v8 = vadd.f32 %v1081_v25, %v1017_v20  ;;  %v1021_v34 = vmul.f32 %v930_v31, %v1764_v38 }
 0x18b   :  { %v1022_v55 = vmul.f32 %v932_v4, %v1759_v36 }
 0x18c   :  { %v1086_v28 = vadd.f32 %v1020_v18, %v1019_v40  ;;  %v614_v7 = vpop.f32.mrb[8].mxu0  ;;  %v1083_v16 = vadd.f32 %v1082_v8, %v1018_v41 }
 0x18d   :  { %v1023_v35 = vmul.f32 %v614_v7, %v1643_v5  ;;  %v936_v17 = vpop.f32.mrb[8].mxu1  ;;  %v616_v22 = vpop.f32.mrb[9].mxu0 }
 0x18e   :  { %v1024_v13 = vmul.f32 %v616_v22, %v1639_v62  ;;  %v938_v23 = vpop.f32.mrb[9].mxu1  ;;  %1084 = vadd.xlane.f32.xlu1 %v1083_v16  ;;  %v1087_v32 = vadd.f32 %v1086_v28, %v1021_v34  ;;  %v1025_v48 = vmul.f32 %v936_v17, %v1772_v42 }
 0x18f   :  { %v1026_v5 = vmul.f32 %v938_v23, %v1767_v39 }
 0x190   :  { %v1091_v51 = vadd.f32 %v1024_v13, %v1023_v35  ;;  %v620_v19 = vpop.f32.mrb[10].mxu0  ;;  %v1088_v26 = vadd.f32 %v1087_v32, %v1022_v55 }
 0x191   :  { %v1027_v38 = vmul.f32 %v620_v19, %v1651_v21  ;;  %v942_v10 = vpop.f32.mrb[10].mxu1  ;;  %v622_v9 = vpop.f32.mrb[11].mxu0 }
 0x192   :  { %v1028_v27 = vmul.f32 %v622_v9, %v1647_v12  ;;  %v944_v30 = vpop.f32.mrb[11].mxu1  ;;  %1089 = vadd.xlane.f32.xlu1 %v1088_v26  ;;  %v1092_v36 = vadd.f32 %v1091_v51, %v1025_v48  ;;  %v1029_v62 = vmul.f32 %v942_v10, %v1780_v46 }
 0x193   :  { %v1030_v21 = vmul.f32 %v944_v30, %v1775_v44 }
 0x194   :  { %v1096_v0 = vadd.f32 %v1028_v27, %v1027_v38  ;;  %v626_v20 = vpop.f32.mrb[12].mxu0  ;;  %v1093_v25 = vadd.f32 %v1092_v36, %v1026_v5 }
 0x195   :  { %v1031_v42 = vmul.f32 %v626_v20, %v1659_v37  ;;  %v948_v11 = vpop.f32.mrb[12].mxu1  ;;  %v628_v14 = vpop.f32.mrb[13].mxu0 }
 0x196   :  { %v1032_v40 = vmul.f32 %v628_v14, %v1655_v29  ;;  %v950_v31 = vpop.f32.mrb[13].mxu1  ;;  %1094 = vadd.xlane.f32.xlu0 %v1093_v25  ;;  %v1097_v39 = vadd.f32 %v1096_v0, %v1029_v62  ;;  %v1033_v12 = vmul.f32 %v948_v11, %v1788_v49 }
 0x197   :  { %v1034_v37 = vmul.f32 %v950_v31, %v1783_v47 }
 0x198   :  { %v1101_v2 = vadd.f32 %v1032_v40, %v1031_v42  ;;  %v632_v41 = vpop.f32.mrb[14].mxu0  ;;  %v1098_v18 = vadd.f32 %v1097_v39, %v1030_v21 }
 0x199   :  { %v1035_v46 = vmul.f32 %v632_v41, %v1667_v53  ;;  %v954_v4 = vpop.f32.mrb[14].mxu1  ;;  %v634_v8 = vpop.f32.mrb[15].mxu0 }
 0x19a   :  { %v1036_v34 = vmul.f32 %v634_v8, %v1663_v45  ;;  %v956_v28 = vpop.f32.mrb[15].mxu1  ;;  %1099 = vadd.xlane.f32.xlu1 %v1098_v18  ;;  %v1102_v44 = vadd.f32 %v1101_v2, %v1033_v12  ;;  %v1037_v29 = vmul.f32 %v954_v4, %v1796_v54  ;;  %v2034_v18 = vld [vmem:[#allocation17_spill] sm:$0xff] }
 0x19b   :  { %v1038_v53 = vmul.f32 %v956_v28, %v1791_v50 }
 0x19c   :  { %v1106_v7 = vadd.f32 %v1036_v34, %v1035_v46  ;;  %v638_v16 = vpop.f32.mrb[16].mxu0  ;;  %v1103_v35 = vadd.f32 %v1102_v44, %v1034_v37  ;;  %v2035_v46 = vld [vmem:[#allocation9_spill] sm:$0xff] }
 0x19d   :  { %v1039_v49 = vmul.f32 %v638_v16, %v1675_v6  ;;  %v960_v17 = vpop.f32.mrb[16].mxu1  ;;  %v640_v22 = vpop.f32.mrb[17].mxu0 }
 0x19e   :  { %v1040_v55 = vmul.f32 %v640_v22, %v1671_v61  ;;  %v962_v13 = vpop.f32.mrb[17].mxu1  ;;  %1104 = vadd.xlane.f32.xlu0 %v1103_v35  ;;  %v1107_v47 = vadd.f32 %v1106_v7, %v1037_v29  ;;  %v1041_v45 = vmul.f32 %v960_v17, %v1804_v57  ;;  %v2038_v35 = vld [vmem:[#allocation18_spill] sm:$0xff]  ;;  %v2039_v17 = vld [vmem:[#allocation11_spill] sm:$0xff] }
 0x19f   :  { %v1042_v6 = vmul.f32 %v962_v13, %v1799_v56  ;;  %v2040_v13 = vld [vmem:[#allocation21_spill] sm:$0xff] }
 0x1a0   :  { %v1111_v23 = vadd.f32 %v1040_v55, %v1039_v49  ;;  %v644_v32 = vpop.f32.mrb[18].mxu0  ;;  %v1108_v48 = vadd.f32 %v1107_v47, %v1038_v53 }
 0x1a1   :  { %v1043_v54 = vmul.f32 %v644_v32, %v1683_v24  ;;  %v966_v51 = vpop.f32.mrb[18].mxu1  ;;  %v646_v19 = vpop.f32.mrb[19].mxu0 }
 0x1a2   :  { %v1044_v26 = vmul.f32 %v646_v19, %v1679_v15  ;;  %v968_v38 = vpop.f32.mrb[19].mxu1  ;;  %1109 = vadd.xlane.f32.xlu1 %v1108_v48  ;;  %v1112_v50 = vadd.f32 %v1111_v23, %v1041_v45  ;;  %v1045_v61 = vmul.f32 %v966_v51, %v1812_v59  ;;  %v2041_v48 = vld [vmem:[#allocation14_spill] sm:$0xff] }
 0x1a3   :  { %v1046_v24 = vmul.f32 %v968_v38, %v1807_v58  ;;  %v2043_v38 = vld [vmem:[#allocation13_spill] sm:$0xff] }
 0x1a4   :  { %v1116_v10 = vadd.f32 %v1044_v26, %v1043_v54  ;;  %v650_v9 = vpop.f32.mrb[20].mxu0  ;;  %v1113_v5 = vadd.f32 %v1112_v50, %v1042_v6  ;;  %v2042_v6 = vld [vmem:[#allocation20_spill] sm:$0xff] }
 0x1a5   :  { %v1047_v57 = vmul.f32 %v650_v9, %v1691_v43  ;;  %v972_v27 = vpop.f32.mrb[20].mxu1  ;;  %v652_v30 = vpop.f32.mrb[21].mxu0  ;;  %v2044_v9 = vld [vmem:[#allocation23_spill] sm:$0xff] }
 0x1a6   :  { %v1048_v36 = vmul.f32 %v652_v30, %v1687_v33  ;;  %v974_v62 = vpop.f32.mrb[21].mxu1  ;;  %1114 = vadd.xlane.f32.xlu0 %v1113_v5  ;;  %v1117_v56 = vadd.f32 %v1116_v10, %v1045_v61  ;;  %v1049_v15 = vmul.f32 %v972_v27, %v1820_v1  ;;  %v2033_v1 = vld [vmem:[#allocation10_spill] sm:$0xff] }
 0x1a7   :  { %v1050_v43 = vmul.f32 %v974_v62, %v1815_v60 }
 0x1a8   :  { %v1121_v0 = vadd.f32 %v1048_v36, %v1047_v57  ;;  %v656_v20 = vpop.f32.mrb[22].mxu0  ;;  %v1118_v25 = vadd.f32 %v1117_v56, %v1046_v24  ;;  %v2045_v24 = vld [vmem:[#allocation16_spill] sm:$0xff] }
 0x1a9   :  { %v1051_v59 = vmul.f32 %v656_v20, %v1699_v63  ;;  %v978_v42 = vpop.f32.mrb[22].mxu1  ;;  %v658_v11 = vpop.f32.mrb[23].mxu0  ;;  %v2047_v20 = vld [vmem:[#allocation15_spill] sm:$0xff] }
 0x1aa   :  { %v1052_v14 = vmul.f32 %v658_v11, %v1695_v52  ;;  %v980_v21 = vpop.f32.mrb[23].mxu1  ;;  %1119 = vadd.xlane.f32.xlu1 %v1118_v25  ;;  %v1122_v58 = vadd.f32 %v1121_v0, %v1049_v15  ;;  %v1053_v33 = vmul.f32 %v978_v42, %v1828_v3  ;;  %v2036_v52 = vld [vmem:[#allocation19_spill] sm:$0xff]  ;;  %v2037_v3 = vld [vmem:[#allocation12_spill] sm:$0xff]  ;;  %v2046_v15 = vld [vmem:[#allocation22_spill] sm:$0xff] }
 0x1ab   :  { %v1054_v63 = vmul.f32 %v980_v21, %v2034_v18  ;;  %v2048_v11 = vld [vmem:[#allocation25_spill] sm:$0xff] }
 0x1ac   :  { %v1126_v40 = vadd.f32 %v1052_v14, %v1051_v59  ;;  %v662_v31 = vpop.f32.mrb[24].mxu0  ;;  %v1123_v39 = vadd.f32 %v1122_v58, %v1050_v43  ;;  %v2049_v58 = vld [vmem:[#allocation24_spill] sm:$0xff] }
 0x1ad   :  { %v1055_v12 = vmul.f32 %v662_v31, %v2033_v1  ;;  %v984_v2 = vpop.f32.mrb[24].mxu1  ;;  %v664_v41 = vpop.f32.mrb[25].mxu0 }
 0x1ae   :  { %v1056_v4 = vmul.f32 %v664_v41, %v2035_v46  ;;  %v986_v8 = vpop.f32.mrb[25].mxu1  ;;  %1124 = vadd.xlane.f32.xlu0 %v1123_v39  ;;  %v1127_v60 = vadd.f32 %v1126_v40, %v1053_v33  ;;  %v1057_v37 = vmul.f32 %v984_v2, %v2036_v52  ;;  %v1152_v39 = vstv %s1997_s2 }
 0x1af   :  { %v1058_v49 = vmul.f32 %v986_v8, %v2038_v35 }
 0x1b0   :  { %v1131_v34 = vadd.f32 %v1056_v4, %v1055_v12  ;;  %v668_v28 = vpop.f32.mrb[26].mxu0  ;;  %v1128_v44 = vadd.f32 %v1127_v60, %v1054_v63 }
 0x1b1   :  { %v1059_v29 = vmul.f32 %v668_v28, %v2037_v3  ;;  %v990_v7 = vpop.f32.mrb[26].mxu1  ;;  %v670_v16 = vpop.f32.mrb[27].mxu0 }
 0x1b2   :  { %v1060_v22 = vmul.f32 %v670_v16, %v2039_v17  ;;  %v992_v53 = vpop.f32.mrb[27].mxu1  ;;  %1129 = vadd.xlane.f32.xlu1 %v1128_v44  ;;  %v1132_v55 = vadd.f32 %v1131_v34, %v1057_v37  ;;  %v1061_v47 = vmul.f32 %v990_v7, %v2040_v13 }
 0x1b3   :  { %v1062_v26 = vmul.f32 %v992_v53, %v2042_v6 }
 0x1b4   :  { %v1136_v45 = vadd.f32 %v1060_v22, %v1059_v29  ;;  %v674_v23 = vpop.f32.mrb[28].mxu0  ;;  %v1133_v32 = vadd.f32 %v1132_v55, %v1058_v49 }
 0x1b5   :  { %v1063_v54 = vmul.f32 %v674_v23, %v2041_v48  ;;  %v996_v51 = vpop.f32.mrb[28].mxu1  ;;  %v676_v19 = vpop.f32.mrb[29].mxu0 }
 0x1b6   :  { %v1064_v50 = vmul.f32 %v676_v19, %v2043_v38  ;;  %v998_v61 = vpop.f32.mrb[29].mxu1  ;;  %1134 = vadd.xlane.f32.xlu0 %v1133_v32  ;;  %v1137_v10 = vadd.f32 %v1136_v45, %v1061_v47  ;;  %v1065_v5 = vmul.f32 %v996_v51, %v2044_v9 }
 0x1b7   :  { %v1066_v0 = vmul.f32 %v998_v61, %v2046_v15 }
 0x1b8   :  { %v1141_v57 = vadd.f32 %v1064_v50, %v1063_v54  ;;  %v680_v27 = vpop.f32.mrb[30].mxu0  ;;  %v1138_v30 = vadd.f32 %v1137_v10, %v1062_v26 }
 0x1b9   :  { %v1067_v36 = vmul.f32 %v680_v27, %v2045_v24  ;;  %v1002_v62 = vpop.f32.mrb[30].mxu1  ;;  %v682_v56 = vpop.f32.mrb[31].mxu0 }
 0x1ba   :  { %v1068_v25 = vmul.f32 %v682_v56, %v2047_v20  ;;  %v1004_v59 = vpop.f32.mrb[31].mxu1  ;;  %1139 = vadd.xlane.f32.xlu1 %v1138_v30  ;;  %v1142_v42 = vadd.f32 %v1141_v57, %v1065_v5  ;;  %v1069_v43 = vmul.f32 %v1002_v62, %v2048_v11 }
 0x1bb   :  { %v1070_v33 = vmul.f32 %v1004_v59, %v2049_v58 }
 0x1bc   :  { %v1146_v14 = vadd.f32 %v1068_v25, %v1067_v36  ;;  %v1143_v21 = vadd.f32 %v1142_v42, %v1066_v0 }
 0x1be   :  { %1144 = vadd.xlane.f32.xlu0 %v1143_v21  ;;  %v1147_v40 = vadd.f32 %v1146_v14, %v1069_v43 }
 0x1c0   :  { %v1148_v31 = vadd.f32 %v1147_v40, %v1070_v33 }
 0x1c2   :  { %1149 = vadd.xlane.f32.xlu1 %v1148_v31 }
 0x213   :  { %v1075_v1 = vpop.xlane.xlu0 %1074 }
 0x214   :  { %v1153_v12 = vadd.f32 %v1152_v39, %v1075_v1 }
 0x216   :  { %1170 = vst.msk [vmem:[%s1998_s3] sm:$0xff] %vm1169_vm0, %v1153_v12 }
 0x217   :  { %v1080_v2 = vpop.xlane.xlu0 %1079 }
 0x218   :  { %v1154_v41 = vadd.f32 %v1152_v39, %v1080_v2 }
 0x21a   :  { %1171 = vst.msk [vmem:[%s1998_s3 + $0x8] sm:$0xff] %vm1169_vm0, %v1154_v41 }
 0x21b   :  { %v1085_v18 = vpop.xlane.xlu1 %1084 }
 0x21c   :  { %v1155_v63 = vadd.f32 %v1152_v39, %v1085_v18 }
 0x21e   :  { %1172 = vst.msk [vmem:[%s1998_s3 + $0x10] sm:$0xff] %vm1169_vm0, %v1155_v63 }
 0x21f   :  { %v1090_v46 = vpop.xlane.xlu1 %1089 }
 0x220   :  { %v1156_v4 = vadd.f32 %v1152_v39, %v1090_v46 }
 0x222   :  { %1173 = vst.msk [vmem:[%s1998_s3 + $0x18] sm:$0xff] %vm1169_vm0, %v1156_v4 }
 0x223   :  { %v1095_v8 = vpop.xlane.xlu0 %1094 }
 0x224   :  { %v1157_v60 = vadd.f32 %v1152_v39, %v1095_v8 }
 0x226   :  { %1174 = vst.msk [vmem:[%s1998_s3 + $0x20] sm:$0xff] %vm1169_vm0, %v1157_v60 }
 0x227   :  { %v1100_v52 = vpop.xlane.xlu1 %1099 }
 0x228   :  { %v1158_v37 = vadd.f32 %v1152_v39, %v1100_v52 }
 0x22a   :  { %1175 = vst.msk [vmem:[%s1998_s3 + $0x28] sm:$0xff] %vm1169_vm0, %v1158_v37 }
 0x22b   :  { %v1105_v34 = vpop.xlane.xlu0 %1104 }
 0x22c   :  { %v1159_v28 = vadd.f32 %v1152_v39, %v1105_v34 }
 0x22e   :  { %1176 = vst.msk [vmem:[%s1998_s3 + $0x30] sm:$0xff] %vm1169_vm0, %v1159_v28 }
 0x22f   :  { %v1110_v44 = vpop.xlane.xlu1 %1109 }
 0x230   :  { %v1160_v3 = vadd.f32 %v1152_v39, %v1110_v44 }
 0x232   :  { %1177 = vst.msk [vmem:[%s1998_s3 + $0x38] sm:$0xff] %vm1169_vm0, %v1160_v3 }
 0x233   :  { %v1115_v29 = vpop.xlane.xlu0 %1114 }
 0x234   :  { %v1161_v7 = vadd.f32 %v1152_v39, %v1115_v29 }
 0x236   :  { %1178 = vst.msk [vmem:[%s1998_s3 + $0x40] sm:$0xff] %vm1169_vm0, %v1161_v7 }
 0x237   :  { %v1120_v16 = vpop.xlane.xlu1 %1119 }
 0x238   :  { %v1162_v35 = vadd.f32 %v1152_v39, %v1120_v16 }
 0x23a   :  { %1179 = vst.msk [vmem:[%s1998_s3 + $0x48] sm:$0xff] %vm1169_vm0, %v1162_v35 }
 0x23b   :  { %v1125_v49 = vpop.xlane.xlu0 %1124 }
 0x23c   :  { %v1163_v17 = vadd.f32 %v1152_v39, %v1125_v49 }
 0x23e   :  { %1180 = vst.msk [vmem:[%s1998_s3 + $0x50] sm:$0xff] %vm1169_vm0, %v1163_v17 }
 0x23f   :  { %v1130_v22 = vpop.xlane.xlu1 %1129 }
 0x240   :  { %v1164_v53 = vadd.f32 %v1152_v39, %v1130_v22 }
 0x242   :  { %1181 = vst.msk [vmem:[%s1998_s3 + $0x58] sm:$0xff] %vm1169_vm0, %v1164_v53 }
 0x243   :  { %v1135_v55 = vpop.xlane.xlu0 %1134 }
 0x244   :  { %v1165_v13 = vadd.f32 %v1152_v39, %v1135_v55 }
 0x246   :  { %1182 = vst.msk [vmem:[%s1998_s3 + $0x60] sm:$0xff] %vm1169_vm0, %v1165_v13 }
 0x247   :  { %v1140_v47 = vpop.xlane.xlu1 %1139 }
 0x248   :  { %v1166_v45 = vadd.f32 %v1152_v39, %v1140_v47 }
 0x24a   :  { %1183 = vst.msk [vmem:[%s1998_s3 + $0x68] sm:$0xff] %vm1169_vm0, %v1166_v45 }
 0x24b   :  { %v1145_v23 = vpop.xlane.xlu0 %1144 }
 0x24c   :  { %v1167_v32 = vadd.f32 %v1152_v39, %v1145_v23 }
 0x24e   :  { %1184 = vst.msk [vmem:[%s1998_s3 + $0x70] sm:$0xff] %vm1169_vm0, %v1167_v32 }
 0x24f   :  { %v1150_v48 = vpop.xlane.xlu1 %1149 }
 0x250   :  { %v1168_v54 = vadd.f32 %v1152_v39, %v1150_v48 }
 0x252   :  { %1185 = vst.msk [vmem:[%s1998_s3 + $0x78] sm:$0xff] %vm1169_vm0, %v1168_v54 }
 0x253   :  { %1190 = vsyncpa [#allocation4], 1 }
 0x254   :  { %1191 = vsyncpa [#allocation6], 1 }

</bundles_post_ra>
